<compile_context>
chip_gen: v7x
topology: tpu7x:2x2x1
jax: 0.10.0
libtpu: 0.0.40
codegen_flags: <defaults>
</compile_context>

<pallas_src>
import jax
import jax.numpy as jnp
from jax import lax
from jax.experimental import pallas as pl
from jax.experimental.pallas import tpu as pltpu

NUM_ROUNDS = 10   # mf_topic.unsqueeze(1).repeat(1, 10, 1, 1)
LANE = 128


def _round_up(x, m):
    return (x + m - 1) // m * m


def _pad_cols(w, target):
    pad = target - w.shape[-1]
    if pad == 0:
        return w
    return jnp.pad(w, [(0, 0)] * (w.ndim - 1) + [(0, pad)])


# ---------------------------------------------------------------------------
# Kernel: one grid step == a block of B batch elements.
# ---------------------------------------------------------------------------
def mf_context_kernel(mf_ref, ctx_ref, w1mf_ref, wctx_ref, b1_ref, b2_ref,
                      watt_ref, o_ref):
    B, P, D_img = mf_ref.shape
    _, R, C2 = ctx_ref.shape
    H2 = b1_ref.shape[-1]          # 2 * Hp  (lane-aligned packed width)
    Hp = H2 // 2

    mf = mf_ref[...]               # (B, P, D_img)   bf16
    ctx = ctx_ref[...]             # (B, R, C2)      bf16

    def gated(lin):
        # packed [tanh-branch | gate-branch] pre-activations, width 2*Hp
        y = jnp.tanh(lin[..., :Hp])
        g = lin[..., Hp:]
        return y * jnp.maximum(g, 0.01 * g)          # LeakyReLU slope 0.01

    # mf half of the fused GatedTrans: ONE big MXU matmul over B*P rows,
    # shared by all R rounds.
    mf_proj = jnp.dot(mf.reshape(B * P, D_img), w1mf_ref[...],
                      preferred_element_type=jnp.float32)          # (B*P, 2Hp)
    mf_proj = mf_proj.reshape(B, P, H2)

    # ctx half of the fused GatedTrans + context_matching GatedTrans merged
    # into one (B*R, C2) x (C2, 4Hp) matmul, then sliced (aligned at 2Hp).
    ctx_all = jnp.dot(ctx.reshape(B * R, C2), wctx_ref[...],
                      preferred_element_type=jnp.float32)          # (B*R, 4Hp)
    ctx_all = ctx_all.reshape(B, R, 2 * H2)
    ctx_proj = ctx_all[..., :H2] + b1_ref[...]                     # (B, R, 2Hp)
    cm_lin = ctx_all[..., H2:] + b2_ref[...]                       # (B, R, 2Hp)
    cm_feat = gated(cm_lin)                                        # (B, R, Hp)

    # mf_emb(fused_feat) for every (batch, round, proposal) triple.
    lin1 = mf_proj[:, None, :, :] + ctx_proj[:, :, None, :]        # (B, R, P, 2Hp)
    mf_feat = gated(lin1)                                          # (B, R, P, Hp)

    prod = mf_feat * cm_feat[:, :, None, :]                        # (B, R, P, Hp)

    # F.normalize(prod, p=2, dim=-1) followed by Linear(H, 1): fold the L2
    # normalization into one rsqrt (EUP).  batt cancels under softmax
    # (img_mask=None path).  Padded lanes are exactly zero, so they do not
    # contribute to either reduction.
    ss = jnp.sum(prod * prod, axis=-1)                             # (B, R, P)
    dotw = jnp.sum(prod * watt_ref[...], axis=-1)                  # (B, R, P)
    score = dotw * lax.rsqrt(jnp.maximum(ss, 1e-24))

    # softmax over proposals; divide moved to the EUP reciprocal.
    m = jnp.max(score, axis=-1, keepdims=True)
    e = jnp.exp(score - m)
    att = e * pl.reciprocal(jnp.sum(e, axis=-1, keepdims=True), approx=True)

    # sum_p att_p * fused_p == [ att @ mf_topic | context_matching ]:
    # only the img half is computed here; the ctx half is an exact
    # passthrough handled outside the kernel.
    out_img = jnp.einsum("brp,bpd->brd", att.astype(mf.dtype), mf,
                         preferred_element_type=jnp.float32)       # (B, R, D_img)
    o_ref[...] = out_img.astype(o_ref.dtype)


# ---------------------------------------------------------------------------
# Wrapper
# ---------------------------------------------------------------------------
def _vmem_capacity_bytes():
    try:
        return int(pltpu.get_tpu_info().vmem_capacity_bytes)
    except Exception:
        return 64 << 20        # conservative default (v7x per-core VMEM)


def _choose_batch_block(bs, P, R, D_img, C2, Hp, budget_bytes):
    H2 = 2 * Hp
    # f32 live intermediates per batch element inside one grid step
    per_b = 4 * (P * H2              # mf_proj
                 + R * 2 * H2        # ctx_all
                 + R * P * H2        # lin1
                 + 2 * R * P * Hp    # mf_feat, prod
                 + R * Hp            # cm_feat
                 + 6 * R * P)        # score / softmax temporaries
    # double-buffered bf16 activation blocks + f32 output block
    per_b += 2 * 2 * (P * D_img + R * C2) + 2 * 4 * R * D_img
    b_vmem = max(1, budget_bytes // max(per_b, 1))
    b_mxu = max(1, pl.cdiv(256, P))          # aim for >= 256 MXU rows
    B = min(bs, b_vmem, b_mxu)
    if bs >= 2:
        B = max(1, min(B, bs // 2))          # keep >= 2 grid steps (megacore)
    while bs % B:                            # exact tiling of the batch
        B -= 1
    return B


def modality_fusion_context(mf_topic, context_matching, params):
    bs, P, D_img = mf_topic.shape
    _, R, C2 = context_matching.shape
    assert R == NUM_ROUNDS
    H = params["watt_t"].shape[0]
    Hp = _round_up(H, LANE)                  # lane-aligned branch width

    # --- weight packing (zero padding is mathematically inert) -------------
    wy1 = _pad_cols(params["wy1_t"], Hp)
    wg1 = _pad_cols(params["wg1_t"], Hp)
    w1 = jnp.concatenate([wy1, wg1], axis=1)                       # (Din, 2Hp)
    w1_mf = w1[:D_img].astype(jnp.bfloat16)                        # (D_img, 2Hp)
    w1_ctx = w1[D_img:]                                            # (C2, 2Hp)
    wy2 = _pad_cols(params["wy2_t"], Hp)
    wg2 = _pad_cols(params["wg2_t"], Hp)
    w2 = jnp.concatenate([wy2, wg2], axis=1)                       # (C2, 2Hp)
    w_ctx = jnp.concatenate([w1_ctx, w2], axis=1).astype(jnp.bfloat16)  # (C2, 4Hp)
    b1 = jnp.concatenate([_pad_cols(params["by1"], Hp),
                          _pad_cols(params["bg1"], Hp)], axis=1)   # (1, 2Hp) f32
    b2 = jnp.concatenate([_pad_cols(params["by2"], Hp),
                          _pad_cols(params["bg2"], Hp)], axis=1)   # (1, 2Hp) f32
    watt = _pad_cols(params["watt_t"].T, Hp)                       # (1, Hp)  f32
    # params["batt"] intentionally unused: softmax(score + c) == softmax(score)
    # on the img_mask=None path.

    mf_bf = mf_topic.astype(jnp.bfloat16)
    ctx_bf = context_matching.astype(jnp.bfloat16)

    # --- per-generation sizing ---------------------------------------------
    vmem_cap = _vmem_capacity_bytes()
    weight_bytes = 2 * (w1_mf.size + w_ctx.size) + 4 * (b1.size + b2.size + watt.size)
    budget = max((vmem_cap // 2) - 2 * weight_bytes, 1 << 20)
    B = _choose_batch_block(bs, P, R, D_img, C2, Hp, budget)
    vmem_limit = max(32 << 20, min(int(vmem_cap * 0.8), 100 << 20))

    weights = (w1_mf, w_ctx, b1, b2, watt)

    def build(weight_pipeline_mode):
        def wspec(arr):
            # Grid-invariant weight block (never changes block index).
            if weight_pipeline_mode is None:
                return pl.BlockSpec(arr.shape, lambda i: (0, 0))
            return pl.BlockSpec(arr.shape, lambda i: (0, 0),
                                pipeline_mode=weight_pipeline_mode)

        grid_spec = pltpu.PrefetchScalarGridSpec(
            num_scalar_prefetch=0,
            grid=(bs // B,),
            in_specs=[
                pl.BlockSpec((B, P, D_img), lambda i: (i, 0, 0)),
                pl.BlockSpec((B, R, C2), lambda i: (i, 0, 0)),
            ] + [wspec(w) for w in weights],
            out_specs=pl.BlockSpec((B, R, D_img), lambda i: (i, 0, 0)),
        )
        return pl.pallas_call(
            mf_context_kernel,
            out_shape=jax.ShapeDtypeStruct((bs, R, D_img), jnp.float32),
            grid_spec=grid_spec,
            compiler_params=pltpu.CompilerParams(
                dimension_semantics=("parallel",),
                vmem_limit_bytes=vmem_limit),
        )

    args = (mf_bf, ctx_bf) + weights
    try:
        # Single-buffer the grid-invariant weights: double-buffering them only
        # burns VMEM that is better spent on a larger batch block.
        out_img = jax.block_until_ready(build(pl.Buffered(1))(*args))
    except Exception:
        # TODO(synk): pl.Buffered(1) pipeline_mode rejected on this jax build;
        # fall back to default (double-buffered) weight blocks.
        out_img = build(None)(*args)

    # ctx half of the output equals context_matching exactly (softmax rows sum
    # to 1); concatenate at the XLA level instead of round-tripping it through
    # the kernel.
    return jnp.concatenate([out_img, context_matching], axis=-1)


# ---------------------------------------------------------------------------
# Parameters (deterministic, kaiming_uniform_-style bounds, zero biases)
# ---------------------------------------------------------------------------
def init_params(key, img_feature_size, lstm_hidden_size):
    H = lstm_hidden_size
    C2 = 2 * H
    Din = img_feature_size + C2
    ks = jax.random.split(key, 5)

    def kaiming_t(k, fan_in, fan_out):
        bound = jnp.sqrt(6.0 / fan_in)
        # PyTorch Linear weight is (out, in); we store the transpose (in, out).
        return jax.random.uniform(k, (fan_in, fan_out), jnp.float32,
                                  -bound, bound)

    return {
        "wy1_t": kaiming_t(ks[0], Din, H), "by1": jnp.zeros((1, H), jnp.float32),
        "wg1_t": kaiming_t(ks[1], Din, H), "bg1": jnp.zeros((1, H), jnp.float32),
        "wy2_t": kaiming_t(ks[2], C2, H),  "by2": jnp.zeros((1, H), jnp.float32),
        "wg2_t": kaiming_t(ks[3], C2, H),  "bg2": jnp.zeros((1, H), jnp.float32),
        "watt_t": kaiming_t(ks[4], H, 1),  "batt": jnp.zeros((1, 1), jnp.float32),
    }


# ---------------------------------------------------------------------------
# Pure-JAX reference (mirrors the PyTorch forward, eval mode, img_mask=None).
# mxu_dtype=None      -> exact f32 semantics of the original module.
# mxu_dtype=bfloat16  -> matmul operands quantized exactly like the kernel
#                        feeds the MXU (f32 accumulation), for a tight check.
# ---------------------------------------------------------------------------
def reference(mf_topic, context_matching, p, mxu_dtype=None):
    hi = lax.Precision.HIGHEST
    q = (lambda x: x) if mxu_dtype is None else (
        lambda x: x.astype(mxu_dtype).astype(jnp.float32))

    bs, P, D_img = mf_topic.shape
    R, C2 = context_matching.shape[1:]
    mf_rep = jnp.broadcast_to(mf_topic[:, None], (bs, R, P, D_img))
    ctx_rep = jnp.broadcast_to(context_matching[:, :, None], (bs, R, P, C2))
    fused = jnp.concatenate([mf_rep, ctx_rep], axis=-1)

    def gated(x, wy, by, wg, bg):
        y = jnp.tanh(jnp.einsum("...i,ij->...j", q(x), q(wy), precision=hi) + by)
        g = jnp.einsum("...i,ij->...j", q(x), q(wg), precision=hi) + bg
        return y * jnp.where(g > 0, g, 0.01 * g)

    mf_feat = gated(fused, p["wy1_t"], p["by1"], p["wg1_t"], p["bg1"])
    cm_feat = gated(context_matching, p["wy2_t"], p["by2"],
                    p["wg2_t"], p["bg2"])[:, :, None]
    prod = mf_feat * cm_feat
    norm = jnp.sqrt(jnp.sum(prod * prod, axis=-1, keepdims=True))
    att_in = prod / jnp.maximum(norm, 1e-12)
    score = jnp.einsum("...h,hk->...k", att_in, p["watt_t"],
                       precision=hi)[..., 0] + p["batt"][0, 0]
    att = jax.nn.softmax(score, axis=-1)

    if mxu_dtype is None:
        return jnp.sum(att[..., None] * fused, axis=2)
    # kernel-matched output path: quantized operands for the img half,
    # exact passthrough for the ctx half (softmax rows sum to 1).
    out_img = jnp.einsum("brp,bpd->brd", q(att), q(mf_topic), precision=hi)
    return jnp.concatenate([out_img, context_matching], axis=-1)


# ---------------------------------------------------------------------------
if __name__ == "__main__":
    bs = 2
    num_p = 8                  # number of image proposals
    img_feature_size = 32
    lstm_hidden_size = 16      # hparams.lstm_hidden_size

    key = jax.random.PRNGKey(0)
    k_mf, k_ctx, k_par = jax.random.split(key, 3)

    mf_topic = jax.random.normal(
        k_mf, (bs, num_p, img_feature_size), jnp.float32)
    context_matching = jax.random.normal(
        k_ctx, (bs, NUM_ROUNDS, 2 * lstm_hidden_size), jnp.float32)
    params = init_params(k_par, img_feature_size, lstm_hidden_size)

    out = modality_fusion_context(mf_topic, context_matching, params)
    out = jax.block_until_ready(out)

    assert out.shape == (bs, NUM_ROUNDS,
                         img_feature_size + 2 * lstm_hidden_size)

    # Tight check against a reference whose matmul operands are quantized the
    # same way the kernel feeds the MXU (bf16 operands, f32 accumulation).
    ref_matched = reference(mf_topic, context_matching, params,
                            mxu_dtype=jnp.bfloat16)
    err_matched = float(jnp.max(jnp.abs(out - ref_matched)))
    assert jnp.allclose(out, ref_matched, atol=1e-2, rtol=1e-2), err_matched

    # Coarse sanity check against the exact f32 semantics of the module
    # (the gap is purely bf16 MXU-operand quantization).
    ref_f32 = reference(mf_topic, context_matching, params, mxu_dtype=None)
    err_f32 = float(jnp.max(jnp.abs(out - ref_f32)))
    assert err_f32 < 0.25, err_f32

    print("KERNEL_OK")
</pallas_src>

<mosaic_0001>
module attributes {stable_mosaic.version = 11 : i64} {
  func.func @mf_context_kernel(%arg0: i32, %arg1: memref<1x8x32xbf16, #tpu.memory_space<vmem>>, %arg2: memref<1x10x32xbf16, #tpu.memory_space<vmem>>, %arg3: memref<32x256xbf16, #tpu.memory_space<vmem>>, %arg4: memref<32x512xbf16, #tpu.memory_space<vmem>>, %arg5: memref<1x256xf32, #tpu.memory_space<vmem>>, %arg6: memref<1x256xf32, #tpu.memory_space<vmem>>, %arg7: memref<1x128xf32, #tpu.memory_space<vmem>>, %arg8: memref<1x10x32xf32, #tpu.memory_space<vmem>>) attributes {dimension_semantics = [#tpu.dimension_semantics<parallel>], iteration_bounds = array<i64: 2>, scalar_prefetch = 0 : i64, scratch_operands = 0 : i64, tpu.core_type = #tpu.core_type<tc>, window_params = [{transform_indices = @transform_0, window_bounds = array<i64: 1, 8, 32>}, {transform_indices = @transform_1, window_bounds = array<i64: 1, 10, 32>}, {pipeline_mode = #tpu.pipeline_mode<synchronous>, transform_indices = @transform_2, window_bounds = array<i64: 32, 256>}, {pipeline_mode = #tpu.pipeline_mode<synchronous>, transform_indices = @transform_3, window_bounds = array<i64: 32, 512>}, {pipeline_mode = #tpu.pipeline_mode<synchronous>, transform_indices = @transform_4, window_bounds = array<i64: 1, 256>}, {pipeline_mode = #tpu.pipeline_mode<synchronous>, transform_indices = @transform_5, window_bounds = array<i64: 1, 256>}, {pipeline_mode = #tpu.pipeline_mode<synchronous>, transform_indices = @transform_6, window_bounds = array<i64: 1, 128>}, {transform_indices = @transform_7, window_bounds = array<i64: 1, 10, 32>}]} {
    %c0 = arith.constant 0 : index
    %c0_0 = arith.constant 0 : index
    %c0_1 = arith.constant 0 : index
    %0 = vector.load %arg1[%c0, %c0_0, %c0_1] : memref<1x8x32xbf16, #tpu.memory_space<vmem>>, vector<1x8x32xbf16>
    %c0_2 = arith.constant 0 : index
    %c0_3 = arith.constant 0 : index
    %c0_4 = arith.constant 0 : index
    %1 = vector.load %arg2[%c0_2, %c0_3, %c0_4] : memref<1x10x32xbf16, #tpu.memory_space<vmem>>, vector<1x10x32xbf16>
    %2 = vector.shape_cast %0 : vector<1x8x32xbf16> to vector<8x32xbf16>
    %c0_5 = arith.constant 0 : index
    %c0_6 = arith.constant 0 : index
    %3 = vector.load %arg3[%c0_5, %c0_6] : memref<32x256xbf16, #tpu.memory_space<vmem>>, vector<32x256xbf16>
    %cst = arith.constant dense<0.000000e+00> : vector<8x256xf32>
    %4 = tpu.matmul %2, %3, %cst {dimension_numbers = #tpu.dot_dimension_numbers<[1], [0], [0], [1], [0, 0, 1, 1], [], []>} : vector<8x32xbf16>, vector<32x256xbf16>, vector<8x256xf32> -> vector<8x256xf32>
    %5 = vector.shape_cast %4 : vector<8x256xf32> to vector<1x8x256xf32>
    %6 = vector.shape_cast %1 : vector<1x10x32xbf16> to vector<10x32xbf16>
    %c0_7 = arith.constant 0 : index
    %c0_8 = arith.constant 0 : index
    %7 = vector.load %arg4[%c0_7, %c0_8] : memref<32x512xbf16, #tpu.memory_space<vmem>>, vector<32x512xbf16>
    %cst_9 = arith.constant dense<0.000000e+00> : vector<10x512xf32>
    %8 = tpu.matmul %6, %7, %cst_9 {dimension_numbers = #tpu.dot_dimension_numbers<[1], [0], [0], [1], [0, 0, 1, 1], [], []>} : vector<10x32xbf16>, vector<32x512xbf16>, vector<10x512xf32> -> vector<10x512xf32>
    %9 = vector.shape_cast %8 : vector<10x512xf32> to vector<1x10x512xf32>
    %10 = vector.extract_strided_slice %9 {offsets = [0, 0, 0], sizes = [1, 10, 256], strides = [1, 1, 1]} : vector<1x10x512xf32> to vector<1x10x256xf32>
    %c0_10 = arith.constant 0 : index
    %c0_11 = arith.constant 0 : index
    %11 = vector.load %arg5[%c0_10, %c0_11] : memref<1x256xf32, #tpu.memory_space<vmem>>, vector<1x256xf32>
    %12 = vector.shape_cast %11 : vector<1x256xf32> to vector<1x1x256xf32>
    %13 = vector.broadcast %12 : vector<1x1x256xf32> to vector<1x10x256xf32>
    %14 = arith.addf %10, %13 : vector<1x10x256xf32>
    %15 = vector.extract_strided_slice %9 {offsets = [0, 0, 256], sizes = [1, 10, 256], strides = [1, 1, 1]} : vector<1x10x512xf32> to vector<1x10x256xf32>
    %c0_12 = arith.constant 0 : index
    %c0_13 = arith.constant 0 : index
    %16 = vector.load %arg6[%c0_12, %c0_13] : memref<1x256xf32, #tpu.memory_space<vmem>>, vector<1x256xf32>
    %17 = vector.shape_cast %16 : vector<1x256xf32> to vector<1x1x256xf32>
    %18 = vector.broadcast %17 : vector<1x1x256xf32> to vector<1x10x256xf32>
    %19 = arith.addf %15, %18 : vector<1x10x256xf32>
    %20 = vector.extract_strided_slice %19 {offsets = [0, 0, 0], sizes = [1, 10, 128], strides = [1, 1, 1]} : vector<1x10x256xf32> to vector<1x10x128xf32>
    %21 = math.tanh %20 : vector<1x10x128xf32>
    %22 = vector.extract_strided_slice %19 {offsets = [0, 0, 128], sizes = [1, 10, 128], strides = [1, 1, 1]} : vector<1x10x256xf32> to vector<1x10x128xf32>
    %cst_14 = arith.constant 0.00999999977 : f32
    %23 = vector.broadcast %cst_14 : f32 to vector<1x10x128xf32>
    %24 = arith.mulf %23, %22 : vector<1x10x128xf32>
    %25 = arith.maximumf %22, %24 : vector<1x10x128xf32>
    %26 = arith.mulf %21, %25 : vector<1x10x128xf32>
    %27 = vector.shape_cast %5 : vector<1x8x256xf32> to vector<1x1x8x256xf32>
    %28 = vector.shape_cast %14 : vector<1x10x256xf32> to vector<1x10x1x256xf32>
    %29 = vector.broadcast %27 : vector<1x1x8x256xf32> to vector<1x10x8x256xf32>
    %30 = vector.broadcast %28 : vector<1x10x1x256xf32> to vector<1x10x8x256xf32>
    %31 = arith.addf %29, %30 : vector<1x10x8x256xf32>
    %32 = vector.extract_strided_slice %31 {offsets = [0, 0, 0, 0], sizes = [1, 10, 8, 128], strides = [1, 1, 1, 1]} : vector<1x10x8x256xf32> to vector<1x10x8x128xf32>
    %33 = math.tanh %32 : vector<1x10x8x128xf32>
    %34 = vector.extract_strided_slice %31 {offsets = [0, 0, 0, 128], sizes = [1, 10, 8, 128], strides = [1, 1, 1, 1]} : vector<1x10x8x256xf32> to vector<1x10x8x128xf32>
    %cst_15 = arith.constant 0.00999999977 : f32
    %35 = vector.broadcast %cst_15 : f32 to vector<1x10x8x128xf32>
    %36 = arith.mulf %35, %34 : vector<1x10x8x128xf32>
    %37 = arith.maximumf %34, %36 : vector<1x10x8x128xf32>
    %38 = arith.mulf %33, %37 : vector<1x10x8x128xf32>
    %39 = vector.shape_cast %26 : vector<1x10x128xf32> to vector<1x10x1x128xf32>
    %40 = vector.broadcast %39 : vector<1x10x1x128xf32> to vector<1x10x8x128xf32>
    %41 = arith.mulf %38, %40 : vector<1x10x8x128xf32>
    %42 = arith.mulf %41, %41 : vector<1x10x8x128xf32>
    %cst_16 = arith.constant dense<0.000000e+00> : vector<1x10x8xf32>
    %43 = vector.multi_reduction <add>, %42, %cst_16 [3] : vector<1x10x8x128xf32> to vector<1x10x8xf32>
    %c0_17 = arith.constant 0 : index
    %c0_18 = arith.constant 0 : index
    %44 = vector.load %arg7[%c0_17, %c0_18] : memref<1x128xf32, #tpu.memory_space<vmem>>, vector<1x128xf32>
    %45 = vector.shape_cast %44 : vector<1x128xf32> to vector<1x1x1x128xf32>
    %46 = vector.broadcast %45 : vector<1x1x1x128xf32> to vector<1x10x8x128xf32>
    %47 = arith.mulf %41, %46 : vector<1x10x8x128xf32>
    %cst_19 = arith.constant dense<0.000000e+00> : vector<1x10x8xf32>
    %48 = vector.multi_reduction <add>, %47, %cst_19 [3] : vector<1x10x8x128xf32> to vector<1x10x8xf32>
    %cst_20 = arith.constant 1.000000e-24 : f32
    %49 = vector.broadcast %cst_20 : f32 to vector<1x10x8xf32>
    %50 = arith.maximumf %43, %49 : vector<1x10x8xf32>
    %51 = math.rsqrt %50 : vector<1x10x8xf32>
    %52 = arith.mulf %48, %51 : vector<1x10x8xf32>
    %cst_21 = arith.constant dense<0xFF800000> : vector<1x10xf32>
    %53 = vector.multi_reduction <maximumf>, %52, %cst_21 [2] : vector<1x10x8xf32> to vector<1x10xf32>
    %54 = vector.shape_cast %53 : vector<1x10xf32> to vector<1x10x1xf32>
    %55 = vector.broadcast %54 : vector<1x10x1xf32> to vector<1x10x8xf32>
    %56 = arith.subf %52, %55 : vector<1x10x8xf32>
    %57 = math.exp %56 : vector<1x10x8xf32>
    %cst_22 = arith.constant dense<0.000000e+00> : vector<1x10xf32>
    %58 = vector.multi_reduction <add>, %57, %cst_22 [2] : vector<1x10x8xf32> to vector<1x10xf32>
    %59 = vector.shape_cast %58 : vector<1x10xf32> to vector<1x10x1xf32>
    %60 = tpu.reciprocal %59 {approx = true} : vector<1x10x1xf32> -> vector<1x10x1xf32>
    %61 = vector.broadcast %60 : vector<1x10x1xf32> to vector<1x10x8xf32>
    %62 = arith.mulf %57, %61 : vector<1x10x8xf32>
    %63 = arith.truncf %62 : vector<1x10x8xf32> to vector<1x10x8xbf16>
    "tpu.trace_start"() <{level = 10 : i32, message = "brp,bpd->brd"}> : () -> ()
    %cst_23 = arith.constant dense<0.000000e+00> : vector<1x10x32xf32>
    %64 = tpu.matmul %63, %0, %cst_23 {dimension_numbers = #tpu.dot_dimension_numbers<[2], [1], [1], [2], [0, 0, 0, 1, 1, 2], [0], [0]>} : vector<1x10x8xbf16>, vector<1x8x32xbf16>, vector<1x10x32xf32> -> vector<1x10x32xf32>
    "tpu.trace_stop"() : () -> ()
    %c0_24 = arith.constant 0 : index
    %c0_25 = arith.constant 0 : index
    %c0_26 = arith.constant 0 : index
    %65 = vector.load %arg8[%c0_24, %c0_25, %c0_26] : memref<1x10x32xf32, #tpu.memory_space<vmem>>, vector<1x10x32xf32>
    tpu.vector_store %arg8[%c0_24, %c0_25, %c0_26], %64 {strides = array<i32>} : memref<1x10x32xf32, #tpu.memory_space<vmem>>, vector<1x10x32xf32>,
    return
  }
  func.func @transform_0(%arg0: i32) -> (i32, i32, i32) {
    %c0_i32 = arith.constant 0 : i32
    %c0_i32_0 = arith.constant 0 : i32
    %c0_i32_1 = arith.constant 0 : i32
    return %arg0, %c0_i32, %c0_i32_0 : i32, i32, i32
  }
  func.func @transform_1(%arg0: i32) -> (i32, i32, i32) {
    %c0_i32 = arith.constant 0 : i32
    %c0_i32_0 = arith.constant 0 : i32
    %c0_i32_1 = arith.constant 0 : i32
    return %arg0, %c0_i32, %c0_i32_0 : i32, i32, i32
  }
  func.func @transform_2(%arg0: i32) -> (i32, i32) {
    %c0_i32 = arith.constant 0 : i32
    %c0_i32_0 = arith.constant 0 : i32
    %c0_i32_1 = arith.constant 0 : i32
    return %c0_i32, %c0_i32_0 : i32, i32
  }
  func.func @transform_3(%arg0: i32) -> (i32, i32) {
    %c0_i32 = arith.constant 0 : i32
    %c0_i32_0 = arith.constant 0 : i32
    %c0_i32_1 = arith.constant 0 : i32
    return %c0_i32, %c0_i32_0 : i32, i32
  }
  func.func @transform_4(%arg0: i32) -> (i32, i32) {
    %c0_i32 = arith.constant 0 : i32
    %c0_i32_0 = arith.constant 0 : i32
    %c0_i32_1 = arith.constant 0 : i32
    return %c0_i32, %c0_i32_0 : i32, i32
  }
  func.func @transform_5(%arg0: i32) -> (i32, i32) {
    %c0_i32 = arith.constant 0 : i32
    %c0_i32_0 = arith.constant 0 : i32
    %c0_i32_1 = arith.constant 0 : i32
    return %c0_i32, %c0_i32_0 : i32, i32
  }
  func.func @transform_6(%arg0: i32) -> (i32, i32) {
    %c0_i32 = arith.constant 0 : i32
    %c0_i32_0 = arith.constant 0 : i32
    %c0_i32_1 = arith.constant 0 : i32
    return %c0_i32, %c0_i32_0 : i32, i32
  }
  func.func @transform_7(%arg0: i32) -> (i32, i32, i32) {
    %c0_i32 = arith.constant 0 : i32
    %c0_i32_0 = arith.constant 0 : i32
    %c0_i32_1 = arith.constant 0 : i32
    return %arg0, %c0_i32, %c0_i32_0 : i32, i32, i32
  }
}

module attributes {stable_mosaic.version = 11 : i64} {
  func.func @mf_context_kernel(%arg0: i32, %arg1: memref<1x8x32xbf16, #tpu.memory_space<vmem>>, %arg2: memref<1x10x32xbf16, #tpu.memory_space<vmem>>, %arg3: memref<32x256xbf16, #tpu.memory_space<vmem>>, %arg4: memref<32x512xbf16, #tpu.memory_space<vmem>>, %arg5: memref<1x256xf32, #tpu.memory_space<vmem>>, %arg6: memref<1x256xf32, #tpu.memory_space<vmem>>, %arg7: memref<1x128xf32, #tpu.memory_space<vmem>>, %arg8: memref<1x10x32xf32, #tpu.memory_space<vmem>>) attributes {dimension_semantics = [#tpu.dimension_semantics<parallel>], iteration_bounds = array<i64: 2>, scalar_prefetch = 0 : i64, scratch_operands = 0 : i64, tpu.core_type = #tpu.core_type<tc>, window_params = [{transform_indices = @transform_0, window_bounds = array<i64: 1, 8, 32>}, {transform_indices = @transform_1, window_bounds = array<i64: 1, 10, 32>}, {pipeline_mode = #tpu.pipeline_mode<synchronous>, transform_indices = @transform_2, window_bounds = array<i64: 32, 256>}, {pipeline_mode = #tpu.pipeline_mode<synchronous>, transform_indices = @transform_3, window_bounds = array<i64: 32, 512>}, {pipeline_mode = #tpu.pipeline_mode<synchronous>, transform_indices = @transform_4, window_bounds = array<i64: 1, 256>}, {pipeline_mode = #tpu.pipeline_mode<synchronous>, transform_indices = @transform_5, window_bounds = array<i64: 1, 256>}, {pipeline_mode = #tpu.pipeline_mode<synchronous>, transform_indices = @transform_6, window_bounds = array<i64: 1, 128>}, {transform_indices = @transform_7, window_bounds = array<i64: 1, 10, 32>}]} {
    %c0 = arith.constant 0 : index
    %c0_0 = arith.constant 0 : index
    %c0_1 = arith.constant 0 : index
    %0 = vector.load %arg1[%c0, %c0_0, %c0_1] : memref<1x8x32xbf16, #tpu.memory_space<vmem>>, vector<1x8x32xbf16>
    %c0_2 = arith.constant 0 : index
    %c0_3 = arith.constant 0 : index
    %c0_4 = arith.constant 0 : index
    %1 = vector.load %arg2[%c0_2, %c0_3, %c0_4] : memref<1x10x32xbf16, #tpu.memory_space<vmem>>, vector<1x10x32xbf16>
    %2 = vector.shape_cast %0 : vector<1x8x32xbf16> to vector<8x32xbf16>
    %c0_5 = arith.constant 0 : index
    %c0_6 = arith.constant 0 : index
    %3 = vector.load %arg3[%c0_5, %c0_6] : memref<32x256xbf16, #tpu.memory_space<vmem>>, vector<32x256xbf16>
    %cst = arith.constant dense<0.000000e+00> : vector<8x256xf32>
    %4 = tpu.matmul %2, %3, %cst {dimension_numbers = #tpu.dot_dimension_numbers<[1], [0], [0], [1], [0, 0, 1, 1], [], []>} : vector<8x32xbf16>, vector<32x256xbf16>, vector<8x256xf32> -> vector<8x256xf32>
    %5 = vector.shape_cast %4 : vector<8x256xf32> to vector<1x8x256xf32>
    %6 = vector.shape_cast %1 : vector<1x10x32xbf16> to vector<10x32xbf16>
    %c0_7 = arith.constant 0 : index
    %c0_8 = arith.constant 0 : index
    %7 = vector.load %arg4[%c0_7, %c0_8] : memref<32x512xbf16, #tpu.memory_space<vmem>>, vector<32x512xbf16>
    %cst_9 = arith.constant dense<0.000000e+00> : vector<10x512xf32>
    %8 = tpu.matmul %6, %7, %cst_9 {dimension_numbers = #tpu.dot_dimension_numbers<[1], [0], [0], [1], [0, 0, 1, 1], [], []>} : vector<10x32xbf16>, vector<32x512xbf16>, vector<10x512xf32> -> vector<10x512xf32>
    %9 = vector.shape_cast %8 : vector<10x512xf32> to vector<1x10x512xf32>
    %10 = vector.extract_strided_slice %9 {offsets = [0, 0, 0], sizes = [1, 10, 256], strides = [1, 1, 1]} : vector<1x10x512xf32> to vector<1x10x256xf32>
    %c0_10 = arith.constant 0 : index
    %c0_11 = arith.constant 0 : index
    %11 = vector.load %arg5[%c0_10, %c0_11] : memref<1x256xf32, #tpu.memory_space<vmem>>, vector<1x256xf32>
    %12 = vector.shape_cast %11 : vector<1x256xf32> to vector<1x1x256xf32>
    %13 = vector.broadcast %12 : vector<1x1x256xf32> to vector<1x10x256xf32>
    %14 = arith.addf %10, %13 : vector<1x10x256xf32>
    %15 = vector.extract_strided_slice %9 {offsets = [0, 0, 256], sizes = [1, 10, 256], strides = [1, 1, 1]} : vector<1x10x512xf32> to vector<1x10x256xf32>
    %c0_12 = arith.constant 0 : index
    %c0_13 = arith.constant 0 : index
    %16 = vector.load %arg6[%c0_12, %c0_13] : memref<1x256xf32, #tpu.memory_space<vmem>>, vector<1x256xf32>
    %17 = vector.shape_cast %16 : vector<1x256xf32> to vector<1x1x256xf32>
    %18 = vector.broadcast %17 : vector<1x1x256xf32> to vector<1x10x256xf32>
    %19 = arith.addf %15, %18 : vector<1x10x256xf32>
    %20 = vector.extract_strided_slice %19 {offsets = [0, 0, 0], sizes = [1, 10, 128], strides = [1, 1, 1]} : vector<1x10x256xf32> to vector<1x10x128xf32>
    %21 = math.tanh %20 : vector<1x10x128xf32>
    %22 = vector.extract_strided_slice %19 {offsets = [0, 0, 128], sizes = [1, 10, 128], strides = [1, 1, 1]} : vector<1x10x256xf32> to vector<1x10x128xf32>
    %cst_14 = arith.constant 0.00999999977 : f32
    %23 = vector.broadcast %cst_14 : f32 to vector<1x10x128xf32>
    %24 = arith.mulf %23, %22 : vector<1x10x128xf32>
    %25 = arith.maximumf %22, %24 : vector<1x10x128xf32>
    %26 = arith.mulf %21, %25 : vector<1x10x128xf32>
    %27 = vector.shape_cast %5 : vector<1x8x256xf32> to vector<1x1x8x256xf32>
    %28 = vector.shape_cast %14 : vector<1x10x256xf32> to vector<1x10x1x256xf32>
    %29 = vector.broadcast %27 : vector<1x1x8x256xf32> to vector<1x10x8x256xf32>
    %30 = vector.broadcast %28 : vector<1x10x1x256xf32> to vector<1x10x8x256xf32>
    %31 = arith.addf %29, %30 : vector<1x10x8x256xf32>
    %32 = vector.extract_strided_slice %31 {offsets = [0, 0, 0, 0], sizes = [1, 10, 8, 128], strides = [1, 1, 1, 1]} : vector<1x10x8x256xf32> to vector<1x10x8x128xf32>
    %33 = math.tanh %32 : vector<1x10x8x128xf32>
    %34 = vector.extract_strided_slice %31 {offsets = [0, 0, 0, 128], sizes = [1, 10, 8, 128], strides = [1, 1, 1, 1]} : vector<1x10x8x256xf32> to vector<1x10x8x128xf32>
    %cst_15 = arith.constant 0.00999999977 : f32
    %35 = vector.broadcast %cst_15 : f32 to vector<1x10x8x128xf32>
    %36 = arith.mulf %35, %34 : vector<1x10x8x128xf32>
    %37 = arith.maximumf %34, %36 : vector<1x10x8x128xf32>
    %38 = arith.mulf %33, %37 : vector<1x10x8x128xf32>
    %39 = vector.shape_cast %26 : vector<1x10x128xf32> to vector<1x10x1x128xf32>
    %40 = vector.broadcast %39 : vector<1x10x1x128xf32> to vector<1x10x8x128xf32>
    %41 = arith.mulf %38, %40 : vector<1x10x8x128xf32>
    %42 = arith.mulf %41, %41 : vector<1x10x8x128xf32>
    %cst_16 = arith.constant dense<0.000000e+00> : vector<1x10x8xf32>
    %43 = vector.multi_reduction <add>, %42, %cst_16 [3] : vector<1x10x8x128xf32> to vector<1x10x8xf32>
    %c0_17 = arith.constant 0 : index
    %c0_18 = arith.constant 0 : index
    %44 = vector.load %arg7[%c0_17, %c0_18] : memref<1x128xf32, #tpu.memory_space<vmem>>, vector<1x128xf32>
    %45 = vector.shape_cast %44 : vector<1x128xf32> to vector<1x1x1x128xf32>
    %46 = vector.broadcast %45 : vector<1x1x1x128xf32> to vector<1x10x8x128xf32>
    %47 = arith.mulf %41, %46 : vector<1x10x8x128xf32>
    %cst_19 = arith.constant dense<0.000000e+00> : vector<1x10x8xf32>
    %48 = vector.multi_reduction <add>, %47, %cst_19 [3] : vector<1x10x8x128xf32> to vector<1x10x8xf32>
    %cst_20 = arith.constant 1.000000e-24 : f32
    %49 = vector.broadcast %cst_20 : f32 to vector<1x10x8xf32>
    %50 = arith.maximumf %43, %49 : vector<1x10x8xf32>
    %51 = math.rsqrt %50 : vector<1x10x8xf32>
    %52 = arith.mulf %48, %51 : vector<1x10x8xf32>
    %cst_21 = arith.constant dense<0xFF800000> : vector<1x10xf32>
    %53 = vector.multi_reduction <maximumf>, %52, %cst_21 [2] : vector<1x10x8xf32> to vector<1x10xf32>
    %54 = vector.shape_cast %53 : vector<1x10xf32> to vector<1x10x1xf32>
    %55 = vector.broadcast %54 : vector<1x10x1xf32> to vector<1x10x8xf32>
    %56 = arith.subf %52, %55 : vector<1x10x8xf32>
    %57 = math.exp %56 : vector<1x10x8xf32>
    %cst_22 = arith.constant dense<0.000000e+00> : vector<1x10xf32>
    %58 = vector.multi_reduction <add>, %57, %cst_22 [2] : vector<1x10x8xf32> to vector<1x10xf32>
    %59 = vector.shape_cast %58 : vector<1x10xf32> to vector<1x10x1xf32>
    %60 = tpu.reciprocal %59 {approx = true} : vector<1x10x1xf32> -> vector<1x10x1xf32>
    %61 = vector.broadcast %60 : vector<1x10x1xf32> to vector<1x10x8xf32>
    %62 = arith.mulf %57, %61 : vector<1x10x8xf32>
    %63 = arith.truncf %62 : vector<1x10x8xf32> to vector<1x10x8xbf16>
    "tpu.trace_start"() <{level = 10 : i32, message = "brp,bpd->brd"}> : () -> ()
    %cst_23 = arith.constant dense<0.000000e+00> : vector<1x10x32xf32>
    %64 = tpu.matmul %63, %0, %cst_23 {dimension_numbers = #tpu.dot_dimension_numbers<[2], [1], [1], [2], [0, 0, 0, 1, 1, 2], [0], [0]>} : vector<1x10x8xbf16>, vector<1x8x32xbf16>, vector<1x10x32xf32> -> vector<1x10x32xf32>
    "tpu.trace_stop"() : () -> ()
    %c0_24 = arith.constant 0 : index
    %c0_25 = arith.constant 0 : index
    %c0_26 = arith.constant 0 : index
    %65 = vector.load %arg8[%c0_24, %c0_25, %c0_26] : memref<1x10x32xf32, #tpu.memory_space<vmem>>, vector<1x10x32xf32>
    tpu.vector_store %arg8[%c0_24, %c0_25, %c0_26], %64 {strides = array<i32>} : memref<1x10x32xf32, #tpu.memory_space<vmem>>, vector<1x10x32xf32>,
    return
  }
  func.func @transform_0(%arg0: i32) -> (i32, i32, i32) {
    %c0_i32 = arith.constant 0 : i32
    %c0_i32_0 = arith.constant 0 : i32
    %c0_i32_1 = arith.constant 0 : i32
    return %arg0, %c0_i32, %c0_i32_0 : i32, i32, i32
  }
  func.func @transform_1(%arg0: i32) -> (i32, i32, i32) {
    %c0_i32 = arith.constant 0 : i32
    %c0_i32_0 = arith.constant 0 : i32
    %c0_i32_1 = arith.constant 0 : i32
    return %arg0, %c0_i32, %c0_i32_0 : i32, i32, i32
  }
  func.func @transform_2(%arg0: i32) -> (i32, i32) {
    %c0_i32 = arith.constant 0 : i32
    %c0_i32_0 = arith.constant 0 : i32
    %c0_i32_1 = arith.constant 0 : i32
    return %c0_i32, %c0_i32_0 : i32, i32
  }
  func.func @transform_3(%arg0: i32) -> (i32, i32) {
    %c0_i32 = arith.constant 0 : i32
    %c0_i32_0 = arith.constant 0 : i32
    %c0_i32_1 = arith.constant 0 : i32
    return %c0_i32, %c0_i32_0 : i32, i32
  }
  func.func @transform_4(%arg0: i32) -> (i32, i32) {
    %c0_i32 = arith.constant 0 : i32
    %c0_i32_0 = arith.constant 0 : i32
    %c0_i32_1 = arith.constant 0 : i32
    return %c0_i32, %c0_i32_0 : i32, i32
  }
  func.func @transform_5(%arg0: i32) -> (i32, i32) {
    %c0_i32 = arith.constant 0 : i32
    %c0_i32_0 = arith.constant 0 : i32
    %c0_i32_1 = arith.constant 0 : i32
    return %c0_i32, %c0_i32_0 : i32, i32
  }
  func.func @transform_6(%arg0: i32) -> (i32, i32) {
    %c0_i32 = arith.constant 0 : i32
    %c0_i32_0 = arith.constant 0 : i32
    %c0_i32_1 = arith.constant 0 : i32
    return %c0_i32, %c0_i32_0 : i32, i32
  }
  func.func @transform_7(%arg0: i32) -> (i32, i32, i32) {
    %c0_i32 = arith.constant 0 : i32
    %c0_i32_0 = arith.constant 0 : i32
    %c0_i32_1 = arith.constant 0 : i32
    return %arg0, %c0_i32, %c0_i32_0 : i32, i32, i32
  }
}

</mosaic_0001>

<bundles_post_ra>
// kernel: tpu_custom_call.1
= control target key start
LH: loop header
LB: loop body
LE: loop exit
PB: predicated region body
PF: predicated region fallthrough
CT: control target
= control target key end

     0   :  { %12 = vsyncpa [#allocation3], 0  ;;  %s2419_s0 = inlined_call_operand.hbm [shape: bf16[2,8,32], index: 0, kind: input, shape index: {}]   ;;  %s2420_s1 = inlined_call_operand.vmem [shape: bf16[2,10,32], index: 1, kind: input, shape index: {}]   ;;  %s2421_s2 = inlined_call_operand.vmem [shape: bf16[32,256], index: 2, kind: input, shape index: {}]   ;;  %s2422_s3 = inlined_call_operand.hbm [shape: bf16[32,512], index: 3, kind: input, shape index: {}]   ;;  %s2423_s4 = inlined_call_operand.vmem [shape: f32[1,256], index: 4, kind: input, shape index: {}]   ;;  %s2424_s5 = inlined_call_operand.vmem [shape: f32[1,256], index: 5, kind: input, shape index: {}]   ;;  %s2425_s6 = inlined_call_operand.vmem [shape: f32[1,128], index: 6, kind: input, shape index: {}]   ;;  %s2426_s7 = inlined_call_operand.vmem [shape: f32[2,10,32], index: 7, kind: output, shape index: {}]  }
   0x1   :  { %14 = vsyncpa [#allocation3 + $0x1], 0 }
   0x2   :  { %15 = vsyncpa [#allocation5], 0  ;;  %s1954_s24 = smov 0   ;;  %s1956_s25 = smov 0  }
   0x3   :  { %s1958_s26 = smov 0   ;;  %s1960_s27 = smov 0  }
   0x4 LB: > { %s1973_s28 = sadd.s32 4294967295, %s1904_s27   ;;  %p41_p0 = scmp.ne.s32.totalorder %s1896_s25, %s1892_s24  ;;  %s1904_s27 = sphi %s1960_s27, %s2441_s27   ;;  %s1900_s26 = sphi %s1958_s26, %s2440_s26   ;;  %s1896_s25 = sphi %s1956_s25, %s2439_s25   ;;  %s1892_s24 = sphi %s1954_s24, %s2438_s24  }
   0x5   : > { %p2427_p1 = scmp.eq.s32.totalorder %s1973_s28, 0  ;;  %p1621_p2 = scmp.ge.s32.totalorder %s1904_s27, 1 }
   0x6   : > { %p209_p3 = scmp.lt.s32.totalorder %s1904_s27, 3  ;;  %s1906_s8 = smov [#allocation4]  }
   0x7   : > { %p1981_p4 = por %p2427_p1, %p41_p0  ;;  %s224_s9 = sshll.u32 %s1906_s8, 4  ;;  %s225_s9 = int_to_ptr.vmem [resolvable:$true] %s224_s9 }
   0x8   : > { %p1985_p5 = pnand %p1621_p2, %p209_p3  ;;  %s1998_s11 = sadd.s32 1, %s1904_s27  }
   0x9   : > { %s2430_s29 = scalar_select %p1981_p4, 1, 0 }
   0xa   : > { %s2431_s30 = scalar_select %p1985_p5, 1, 0 }
   0xb   : > { %p1669_p6 = pneg %p1985_p5  ;;  %s28_s12 = sadd.s32 1, %s1900_s26 }
   0xc   : > { %s25_s13 = ssub.s32 %s1904_s27, %s1998_s11  ;;  %s1808_s16 = scalar_lea.hbm %s2422_s3, 1024 }
   0xd   : > { %p1993_p7 = pnand %p1669_p6, %p2427_p1  ;;  %p1809_p8 = scmp.ne.s32.totalorder %s2422_s3, %s1808_s16 }
   0xe   : > { %p1815_p12 = scmp.lt.u32.totalorder %s1808_s16, %s2422_s3 }
   0xf   : > { %p1810_p9 = pneg %p1993_p7 }
  0x11   : > { %p1811_p10 = pnand %p1810_p9, %p1809_p8 }
  0x13   : > { %p1812_p11 = pneg %p1811_p10 }
  0x15   : > { %p1817_p13 = pnand %p1815_p12, %p1812_p11 }
  0x17   : > { %1820 = shalt.err (!%p1817_p13)
}
  0x18   : > { %s1821_s21 = scalar_lea.vmem %s225_s9, 1024  ;;  %p1829_p6 = scmp.lt.s32.totalorder %s225_s9, %s225_s9 }
  0x19   : > { %p1822_p0 = scmp.ne.s32.totalorder %s225_s9, %s1821_s21  ;;  %p1830_p1 = scmp.lt.s32.totalorder %s1821_s21, %s1821_s21 }
  0x1b   : > { %p1824_p2 = pnand %p1822_p0, %p1810_p9  ;;  %p1831_p4 = por %p1830_p1, %p1829_p6 }
  0x1d   : > { %p1825_p3 = pneg %p1824_p2 }
  0x1f   : > { %p1832_p5 = pnand %p1831_p4, %p1825_p3 }
  0x21   : > { %1835 = shalt.err (!%p1832_p5)
}
  0x22   : > { %s1907_s22 = smov 256   ;;  %s1908_s23 = smov 16  }
  0x23   : > { %1672 = dma.hbm_to_vmem [thread:$0]  (!%p1993_p7), %s2422_s3, 1024, %s225_s9, [#allocation5], %s1907_s22, %s1907_s22, %s1908_s23  }
  0x24   : > { %p26_p8 = scmp.eq.s32.totalorder %s25_s13, 0  ;;  %p35_p9 = scmp.ne.s32.totalorder %s1900_s26, %s1896_s25 }
  0x25   : > { %p36_p1 = scmp.eq.s32.totalorder %s1904_s27, 0  ;;  %p1678_p4 = scmp.lt.s32.totalorder %s1904_s27, 2 }
  0x26   : > { %s2024_s14 = scalar_select %p26_p8, %s1900_s26, %s28_s12  }
  0x27   : > { %p37_p5 = por %p36_p1, %p35_p9  ;;  %s247_s15 = sand.u32 1, %s1900_s26  }
  0x28   : > { %s1624_s16 = sshll.u32 %s247_s15, 2  ;;  %s1625_s17 = sshll.u32 %s1904_s27, 6 }
  0x29   : > { %s2031_s20 = scalar_lea.hbm %s2419_s0, %s1625_s17  ;;  %s251_s9 = scalar_lea.vmem [#allocation2], %s1624_s16 }
  0x2a   : > { %s258_s10 = sshll.u32 %s251_s9, 4  ;;  %p2035_p7 = pnand %p1678_p4, %p37_p5  ;;  %s2033_s10 = int_to_ptr.vmem [resolvable:$true] %s258_s10 }
  0x2b   : > { %s248_s27 = scalar_lea.sflag [#allocation3], %s247_s15  ;;  %s1836_s13 = scalar_lea.hbm %s2031_s20, 64 }
  0x2c   : > { %p1837_p10 = scmp.ne.s32.totalorder %s2031_s20, %s1836_s13  ;;  %p1838_p11 = pneg %p2035_p7 }
  0x2d   : > { %s1841_s23 = scalar_lea.hbm %s2419_s0, 128  ;;  %p1842_p0 = scmp.lt.u32.totalorder %s2031_s20, %s2419_s0 }
  0x2e   : > { %p1839_p12 = pnand %p1838_p11, %p1837_p10  ;;  %p1843_p2 = scmp.lt.u32.totalorder %s1841_s23, %s1836_s13 }
  0x2f   : > { %p1845_p6 = scmp.lt.u32.totalorder %s1836_s13, %s2031_s20 }
  0x30   : > { %p1840_p13 = pneg %p1839_p12  ;;  %p1844_p3 = por %p1843_p2, %p1842_p0 }
  0x32   : > { %p1846_p8 = por %p1845_p6, %p1844_p3 }
  0x34   : > { %p1847_p9 = pnand %p1846_p8, %p1840_p13 }
  0x36   : > { %1850 = shalt.err (!%p1847_p9)
}
  0x37   : > { %s1851_s15 = scalar_lea.vmem %s2033_s10, 64  ;;  %s1909_s16 = smov [#allocation2]  }
  0x38   : > { %p1852_p1 = scmp.ne.s32.totalorder %s2033_s10, %s1851_s15  ;;  %s1856_s17 = sshll.u32 %s1909_s16, 4  ;;  %s1857_s17 = int_to_ptr.vmem [resolvable:$false] %s1856_s17 }
  0x39   : > { %s1858_s18 = scalar_lea.vmem %s1857_s17, 128  ;;  %p1859_p10 = scmp.lt.s32.totalorder %s2033_s10, %s1857_s17 }
  0x3a   : > { %p1854_p4 = pnand %p1852_p1, %p1838_p11  ;;  %p1860_p12 = scmp.lt.s32.totalorder %s1858_s18, %s1851_s15 }
  0x3c   : > { %p1855_p5 = pneg %p1854_p4  ;;  %p1861_p0 = por %p1860_p12, %p1859_p10 }
  0x3e   : > { %p1862_p2 = pnand %p1861_p0, %p1855_p5 }
  0x40   : > { %1865 = shalt.err (!%p1862_p2)
}
  0x41   : > { %1676 = dma.hbm_to_vmem [thread:$0]  (!%p2035_p7), %s2031_s20, 64, %s2033_s10, %s248_s27  }
  0x42   : > { %p2434_p13 = scmp.ne.s32.totalorder %s2431_s30, 0 }
  0x43   : > { %s277_s19 = sand.u32 (!%p2434_p13), 1, %s1896_s25   ;;  %p2435_p11 = scmp.ne.s32.totalorder (!%p2434_p13), %s2430_s29, 0 }
  0x44   : > { %275 = sbr.rel (%p2434_p13) target bundleno = 1367 (0x557), region = 48  ;;  %s2067_s9 = sshll.u32 (!%p2434_p13), %s277_s19, 2 }
  0x45   : > { %s278_s13 = scalar_lea.sflag (!%p2434_p13), [#allocation3], %s277_s19  ;;  %s281_s21 = scalar_lea.vmem (!%p2434_p13), [#allocation2], %s2067_s9 }
  0x4b   : > { %1883 = dma.done.wait (%p2435_p11), %s278_s13, 64  }
  0x4c   : > { %1885 = vsyncadd (%p2435_p11), %s278_s13, 4294967232  ;;  %p2436_p3 = scmp.eq.s32.totalorder %s1973_s28, 0 }
  0x4e   : > { %1887 = dma.done.wait (%p2436_p3), [#allocation5], 1024   ;;  %p2437_p7 = pmov %p2436_p3 }
  0x4f   : > { %p321_p6 = scmp.lt.s32.totalorder %s1973_s28, 1  ;;  %v1910_v0 = vmov 0   ;;  %v1721_v1 = vld [vmem:[%s2421_s2 + $0x4] ss:$8 sps:$4 sm:$0xff]   ;;  %v1725_v3 = vld [vmem:[%s2421_s2] ss:$8 sps:$4 sm:$0xff]   ;;  %v548_v15 = vlaneseq }
  0x50   : > { %1889 = vsyncadd (%p2437_p7), [#allocation5], 4294966272  ;;  %395 = vmatprep.mubr.bf16.mxu0 %v1910_v0  ;;  %492 = vmatprep.mubr.bf16.mxu1 %v1910_v0  ;;  %v1723_v2 = vld [vmem:[#allocation4 + $0x4] ss:$16 sps:$4 sm:$0xff]   ;;  %v1726_v4 = vld [vmem:[#allocation4] ss:$16 sps:$4 sm:$0xff]  }
  0x51   : > { %1720 = vset.pattern.permute.xlu1 %v1910_v0  ;;  %1719 = vset.pattern.permute.xlu0 %v1910_v0  ;;  %s2443_s28 = smov (!%p321_p6, %s1973_s28), 1  ;;  %v1727_v5 = vld [vmem:[%s2421_s2 + $0x14] ss:$8 sps:$4 sm:$0xff]   ;;  %v1731_v7 = vld [vmem:[%s2421_s2 + $0x10] ss:$8 sps:$4 sm:$0xff]   ;;  %vm359_vm0 = vcmask 261120  }
  0x52   : > { %s1653_s29 = sshll.u32 %s2443_s28, 3  ;;  %363 = vmatprep.subr.bf16.mxu0 %v1721_v1  ;;  %460 = vmatprep.subr.bf16.mxu1 %v1723_v2  ;;  %v1729_v6 = vld [vmem:[#allocation4 + $0x24] ss:$16 sps:$4 sm:$0xff]   ;;  %v1732_v8 = vld [vmem:[#allocation4 + $0x20] ss:$16 sps:$4 sm:$0xff]   ;;  %v2105_v16 = vshrl.u32 %v548_v15, 7 }
  0x53   : > { %364 = vmatpush1.bf16.msra.mxu0 %v1725_v3  ;;  %461 = vmatpush1.bf16.msra.mxu1 %v1726_v4  ;;  %s325_s16 = scalar_lea.vmem %s2420_s1, %s1653_s29  ;;  %v2098_v9 = vld [vmem:[%s281_s21] sm:$0xf]  ;;  %v1911_v20 = vmov 1966171168   ;;  %vm1105_vm1 = vcmask 1041409   ;;  %vm1107_vm2 = vcmask 1042434  }
  0x54   : > { %365 = vmatprep.subr.bf16.mxu0 %v1727_v5  ;;  %462 = vmatprep.subr.bf16.mxu1 %v1729_v6  ;;  %v1733_v10 = vld [vmem:[%s325_s16] sm:$0x1f]   ;;  %v2108_v17 = vsub.s32 0, %v2105_v16  ;;  %v2114_v19 = vsub.s32 1, %v2105_v16  ;;  %v593_v21 = vunpack.c.l.s4 %v1911_v20  ;;  %vm1109_vm3 = vcmask 1043459   ;;  %s1654_s30 = sshll.u32 %s2443_s28, 4 }
  0x55   : > { %v1736_v11 = vld [vmem:[#allocation4 + $0xc] ss:$16 sps:$4 sm:$0xff]   ;;  %v1734_v12 = vld [vmem:[#allocation4 + $0x8] ss:$16 sps:$4 sm:$0xff]   ;;  %vm1111_vm4 = vcmask 1044484   ;;  %vm1113_vm5 = vcmask 1045509   ;;  %s330_s10 = scalar_lea.vmem %s2426_s7, %s1654_s30 }
  0x56   : > { %v1739_v13 = vld [vmem:[#allocation4 + $0x2c] ss:$16 sps:$4 sm:$0xff]   ;;  %v1737_v14 = vld [vmem:[#allocation4 + $0x28] ss:$16 sps:$4 sm:$0xff]   ;;  %v594_v24 = vunpack.c.0.s8 %v593_v21  ;;  %vm1115_vm6 = vcmask 1046534   ;;  %vm1117_vm7 = vcmask 1047559  }
  0x57   : > { %366 = vmatpush1.bf16.msra.mxu0 %v1731_v7  ;;  %463 = vmatpush1.bf16.msra.mxu1 %v1732_v8  ;;  %v546_v18 = vld [vmem:[%s2423_s4] sm:$0x3]  ;;  %vm1122_vm8 = vcmask 64512   ;;  %vm1126_vm9 = vcmask 58368   ;;  %vm1484_vm10 = vcmask 1043456   ;;  %vm1913_vm11 = vmmov 0  }
  0x58   : > { %503 = vmatprep.subr.bf16.mxu0 %v1736_v11  ;;  %v551_v22 = vrot.slane %v546_v18, %v2108_v17  ;;  %v555_v23 = vrot.slane %v546_v18, %v2114_v19  ;;  %v2123_v31 = vsub.s32 %v594_v24, %v2105_v16  ;;  %v562_v43 = vld [vmem:[%s2424_s5] sm:$0x3]  ;;  %vm1529_vm12 = vcmask 254976  }
  0x59   : > { %v567_v50 = vrot.slane %v562_v43, %v2108_v17  ;;  %v571_v60 = vrot.slane %v562_v43, %v2114_v19 }
  0x5a   : > { %1637 = vmatmul.mubr.msk.bf16.vlgmr.msra.gmra.mrb[0].mxu0 %vm359_vm0, %v2098_v9  ;;  %1647 = vmatmul.mubr.msk.bf16.vlgmr.msra.gmra.mrb[0].mxu1 %vm359_vm0, %v1733_v10 }
  0x5b   : > { %504 = vmatpush1.bf16.msra.mxu0 %v1734_v12  ;;  %535 = vmatprep.mubr.bf16.mxu0 %v1910_v0 }
  0x5c   : > { %505 = vmatprep.subr.bf16.mxu0 %v1739_v13 }
  0x5f   : > { %506 = vmatpush1.bf16.msra.mxu0 %v1737_v14 }
  0x62   : > { %1648 = vmatmul.mubr.msk.bf16.vlgmr.msra.gmra.mrb[4].mxu0 %vm359_vm0, %v1733_v10 }
 0x12d   : > { %v2118_v25 = vpop.f32.mrb[0].mxu0  ;;  %v494_v26 = vpop.f32.mrb[0].mxu1 }
 0x12e   : > { %v558_v27 = vadd.f32 %v551_v22, %v494_v26  ;;  %v2120_v28 = vpop.f32.mrb[1].mxu0  ;;  %v496_v29 = vpop.f32.mrb[1].mxu1 }
 0x12f   : > { %v559_v30 = vadd.f32 %v555_v23, %v496_v29  ;;  %v401_v32 = vpop.f32.mrb[2].mxu0  ;;  %v498_v33 = vpop.f32.mrb[2].mxu1 }
 0x130   : > { %v560_v34 = vadd.f32 %v551_v22, %v498_v33  ;;  %v402_v35 = vpop.f32.mrb[3].mxu0  ;;  %v500_v36 = vpop.f32.mrb[3].mxu1 }
 0x131   : > { %v590_v37 = vcombine.low %v558_v27, %v559_v30  ;;  %v591_v38 = vcombine.high %v558_v27, %v559_v30  ;;  %v561_v39 = vadd.f32 %v555_v23, %v500_v36 }
 0x133   : > { %v598_v40 = vrot.slane %v590_v37, %v2123_v31  ;;  %v605_v41 = vrot.slane %v591_v38, %v2123_v31  ;;  %v640_v42 = vcombine.low %v560_v34, %v561_v39 }
 0x135   : > { %v606_v44 = vcombine.high %v598_v40, %v598_v40  ;;  %v607_v45 = vcombine.high %v605_v41, %v605_v41  ;;  %v614_v46 = vrot.slane %v598_v40, %v2123_v31  ;;  %v621_v47 = vrot.slane %v605_v41, %v2123_v31  ;;  %v537_v48 = vpop.f32.mrb[4].mxu0 }
 0x136   : > { %v647_v49 = vrot.slane %v640_v42, %v2123_v31  ;;  %v539_v51 = vpop.f32.mrb[5].mxu0  ;;  %v574_v8 = vadd.f32 %v567_v50, %v537_v48 }
 0x137   : > { %v628_v52 = vrot.slane %v606_v44, %v2123_v31  ;;  %v2136_v53 = vrot.slane %v607_v45, %v2123_v31  ;;  %v636_v54 = vcombine.high %v614_v46, %v614_v46  ;;  %v2138_v55 = vcombine.high %v621_v47, %v621_v47  ;;  %v541_v56 = vpop.f32.mrb[6].mxu0 }
 0x138   : > { %v666_v57 = vrot.slane %v614_v46, %v2108_v17  ;;  %v698_v58 = vrot.slane %v621_v47, %v2108_v17  ;;  %v648_v59 = vcombine.high %v647_v49, %v647_v49  ;;  %v543_v61 = vpop.f32.mrb[7].mxu0  ;;  %v655_v12 = vrot.slane %v647_v49, %v2123_v31 }
 0x139   : > { %v638_v62 = vcombine.high %v628_v52, %v628_v52  ;;  %v2145_v63 = vcombine.high %v2136_v53, %v2136_v53  ;;  %v674_v0 = vrot.slane %v628_v52, %v2108_v17  ;;  %v682_v1 = vrot.slane %v636_v54, %v2108_v17 }
 0x13a   : > { %v706_v2 = vrot.slane %v2136_v53, %v2108_v17  ;;  %v714_v3 = vrot.slane %v2138_v55, %v2108_v17  ;;  %v763_v4 = vadd.f32 %v666_v57, %v2118_v25  ;;  %v771_v5 = vadd.f32 %v698_v58, %v2118_v25 }
 0x13b   : > { %v765_v6 = vadd.f32 %v674_v0, %v2118_v25  ;;  %v767_v7 = vadd.f32 %v682_v1, %v2118_v25  ;;  %v690_v13 = vrot.slane %v638_v62, %v2108_v17  ;;  %v702_v14 = vrot.slane %v621_v47, %v2114_v19 }
 0x13c   : > { %v773_v10 = vadd.f32 %v706_v2, %v2118_v25  ;;  %v775_v11 = vadd.f32 %v714_v3, %v2118_v25  ;;  %1740 = vtanh.f32 %v763_v4  ;;  %v2163_v18 = vrot.slane %v648_v59, %v2123_v31 }
 0x13d   : > { %1742 = vtanh.f32 %v765_v6  ;;  %v722_v20 = vrot.slane %v2145_v63, %v2108_v17  ;;  %v730_v21 = vrot.slane %v655_v12, %v2108_v17  ;;  %v575_v22 = vadd.f32 %v571_v60, %v539_v51 }
 0x13e   : > { %1744 = vtanh.f32 %v771_v5  ;;  %v734_v23 = vrot.slane %v655_v12, %v2114_v19  ;;  %v738_v24 = vrot.slane %v2163_v18, %v2108_v17  ;;  %v576_v26 = vadd.f32 %v567_v50, %v541_v56 }
 0x13f   : > { %1746 = vtanh.f32 %v773_v10  ;;  %v779_v27 = vadd.f32 %v730_v21, %v2118_v25  ;;  %v2172_v29 = vadd.f32 %v571_v60, %v543_v61  ;;  %v670_v30 = vrot.slane %v614_v46, %v2114_v19 }
 0x140   : > { %1748 = vtanh.f32 %v775_v11  ;;  %v742_v32 = vrot.slane %v2163_v18, %v2114_v19  ;;  %v781_v33 = vadd.f32 %v738_v24, %v2118_v25  ;;  %v686_v34 = vrot.slane %v636_v54, %v2114_v19 }
 0x141   : > { %1750 = vtanh.f32 %v574_v8  ;;  %v580_v35 = vmul.f32 0.01, %v575_v22  ;;  %v764_v36 = vadd.f32 %v670_v30, %v2120_v28  ;;  %v678_v37 = vrot.slane %v628_v52, %v2114_v19 }
 0x142   : > { %1752 = vtanh.f32 %v779_v27  ;;  %v2182_v38 = vadd.f32 %v686_v34, %v2120_v28  ;;  %v694_v39 = vrot.slane %v638_v62, %v2114_v19  ;;  %v769_v40 = vadd.f32 %v690_v13, %v2118_v25 }
 0x143   : > { %1754 = vtanh.f32 %v781_v33  ;;  %v793_v41 = vmul.f32 0.01, %v764_v36  ;;  %v766_v42 = vadd.f32 %v678_v37, %v2120_v28  ;;  %v772_v43 = vadd.f32 %v702_v14, %v2120_v28 }
 0x144   : > { %1756 = vtanh.f32 %v576_v26  ;;  %v581_v44 = vmul.f32 0.01, %v2172_v29  ;;  %v770_v45 = vadd.f32 %v694_v39, %v2120_v28  ;;  %v710_v46 = vrot.slane %v2136_v53, %v2114_v19 }
 0x145   : > { %1758 = vtanh.f32 %v767_v7  ;;  %v803_v48 = vmax.f32 %v764_v36, %v793_v41  ;;  %v794_v49 = vmul.f32 0.01, %v766_v42  ;;  %v797_v50 = vmul.f32 0.01, %v772_v43 }
 0x146   : > { %v1741_v47 = vpop.eup %1740  ;;  %1760 = vtanh.f32 %v769_v40  ;;  %v582_v52 = vmax.f32 %v575_v22, %v580_v35  ;;  %v795_v54 = vmul.f32 0.01, %v2182_v38  ;;  %v774_v56 = vadd.f32 %v710_v46, %v2120_v28 }
 0x147   : > { %v1743_v51 = vpop.eup %1742  ;;  %v718_v57 = vrot.slane %v2138_v55, %v2114_v19  ;;  %v813_v59 = vmul.f32 %v1741_v47, %v803_v48  ;;  %v804_v60 = vmax.f32 %v766_v42, %v794_v49  ;;  %v807_v61 = vmax.f32 %v772_v43, %v797_v50 }
 0x148   : > { %v1745_v58 = vpop.eup %1744  ;;  %v726_v53 = vrot.slane %v2145_v63, %v2114_v19  ;;  %v796_v0 = vmul.f32 0.01, %v770_v45  ;;  %v798_v1 = vmul.f32 0.01, %v774_v56  ;;  %v777_v3 = vadd.f32 %v722_v20, %v2118_v25 }
 0x149   : > { %v1747_v62 = vpop.eup %1746  ;;  %v776_v2 = vadd.f32 %v718_v57, %v2120_v28  ;;  %v814_v5 = vmul.f32 %v1743_v51, %v804_v60  ;;  %v817_v6 = vmul.f32 %v1745_v58, %v807_v61  ;;  %v780_v55 = vadd.f32 %v734_v23, %v2120_v28 }
 0x14a   : > { %v1749_v4 = vpop.eup %1748  ;;  %v2201_v7 = vadd.f32 %v726_v53, %v2120_v28  ;;  %v808_v10 = vmax.f32 %v774_v56, %v798_v1  ;;  %1762 = vtanh.f32 %v777_v3  ;;  %v782_v63 = vadd.f32 %v742_v32, %v2120_v28 }
 0x14b   : > { %v1751_v8 = vpop.eup %1750  ;;  %v799_v11 = vmul.f32 0.01, %v776_v2  ;;  %v583_v14 = vmax.f32 %v2172_v29, %v581_v44  ;;  %v801_v18 = vmul.f32 0.01, %v780_v55  ;;  %v805_v20 = vmax.f32 %v2182_v38, %v795_v54 }
 0x14c   : > { %v1753_v12 = vpop.eup %1752  ;;  %v584_v13 = vmul.f32 %v1751_v8, %v582_v52  ;;  %v818_v21 = vmul.f32 %v1747_v62, %v808_v10  ;;  %v802_v24 = vmul.f32 0.01, %v782_v63  ;;  %v806_v30 = vmax.f32 %v770_v45, %v796_v0 }
 0x14d   : > { %v1755_v25 = vpop.eup %1754  ;;  %v809_v22 = vmax.f32 %v776_v2, %v799_v11  ;;  %v800_v33 = vmul.f32 0.01, %v2201_v7  ;;  %v811_v35 = vmax.f32 %v780_v55, %v801_v18 }
 0x14e   : > { %v1757_v26 = vpop.eup %1756  ;;  %v825_v27 = vcombine.high %v584_v13, %v584_v13  ;;  %v832_v23 = vrot.slane %v584_v13, %v2123_v31  ;;  %v812_v36 = vmax.f32 %v782_v63, %v802_v24 }
 0x14f   : > { %v1759_v34 = vpop.eup %1758  ;;  %v585_v28 = vmul.f32 %v1757_v26, %v583_v14  ;;  %v819_v32 = vmul.f32 %v1749_v4, %v809_v22  ;;  %v821_v43 = vmul.f32 %v1753_v12, %v811_v35  ;;  %v810_v53 = vmax.f32 %v2201_v7, %v800_v33 }
 0x150   : > { %v1761_v29 = vpop.eup %1760  ;;  %v839_v37 = vrot.slane %v825_v27, %v2123_v31  ;;  %v840_v39 = vcombine.high %v832_v23, %v832_v23  ;;  %v848_v38 = vrot.slane %v832_v23, %v2123_v31  ;;  %v815_v40 = vmul.f32 %v1759_v34, %v805_v20 }
 0x151   : > { %v880_v41 = vrot.slane %v585_v28, %v2123_v31  ;;  %v816_v42 = vmul.f32 %v1761_v29, %v806_v30  ;;  %v822_v44 = vmul.f32 %v1755_v25, %v812_v36 }
 0x152   : > { %v899_v45 = vrot.slane %v848_v38, %v2108_v17  ;;  %v870_v46 = vcombine.high %v848_v38, %v848_v38  ;;  %v862_v47 = vrot.slane %v840_v39, %v2123_v31  ;;  %v855_v48 = vrot.slane %v839_v37, %v2123_v31 }
 0x153   : > { %v841_v49 = vcombine.high %v839_v37, %v839_v37  ;;  %v888_v50 = vrot.slane %v880_v41, %v2123_v31  ;;  %v881_v10 = vcombine.high %v880_v41, %v880_v41 }
 0x154   : > { %v946_v51 = vmul.f32 %v899_v45, %v813_v59  ;;  %v907_v52 = vrot.slane %v870_v46, %v2108_v17  ;;  %v903_v54 = vrot.slane %v862_v47, %v2108_v17  ;;  %v872_v56 = vcombine.high %v862_v47, %v862_v47  ;;  %v1763_v57 = vpop.eup %1762  ;;  %v1649_v59 = vld [vmem:[%s2425_s6] ss:$0 sm:$0xff] }
 0x155   : > { %v915_v58 = vrot.slane %v855_v48, %v2108_v17  ;;  %v869_v60 = vrot.slane %v841_v49, %v2123_v31  ;;  %v871_v61 = vcombine.high %v855_v48, %v855_v48  ;;  %v931_v2 = vrot.slane %v888_v50, %v2108_v17 }
 0x156   : > { %v956_v62 = vmul.f32 %v946_v51, %v946_v51  ;;  %v948_v0 = vmul.f32 %v907_v52, %v815_v40  ;;  %v947_v1 = vmul.f32 %v903_v54, %v814_v5  ;;  %v911_v3 = vrot.slane %v872_v56, %v2108_v17 }
 0x157   : > { %v950_v4 = vmul.f32 %v915_v58, %v817_v6  ;;  %v919_v55 = vrot.slane %v869_v60, %v2108_v17  ;;  %v923_v8 = vrot.slane %v871_v61, %v2108_v17  ;;  %v820_v7 = vmul.f32 %v1763_v57, %v810_v53 }
 0x158   : > { %966 = vadd.xlane.f32.xlu0 %v956_v62  ;;  %v958_v11 = vmul.f32 %v948_v0, %v948_v0  ;;  %v949_v63 = vmul.f32 %v911_v3, %v816_v42  ;;  %v993_v13 = vmul.f32 %v1649_v59, %v946_v51  ;;  %v873_v14 = vcombine.high %v869_v60, %v869_v60 }
 0x159   : > { %v951_v12 = vmul.f32 %v919_v55, %v818_v21  ;;  %v952_v5 = vmul.f32 %v923_v8, %v819_v32  ;;  %v954_v18 = vmul.f32 %v931_v2, %v821_v43  ;;  %v994_v25 = vmul.f32 %v1649_v59, %v947_v1 }
 0x15a   : > { %970 = vadd.xlane.f32.xlu1 %v958_v11  ;;  %v927_v20 = vrot.slane %v873_v14, %v2108_v17  ;;  %v895_v6 = vrot.slane %v881_v10, %v2123_v31  ;;  %v957_v22 = vmul.f32 %v947_v1, %v947_v1  ;;  %v959_v27 = vmul.f32 %v949_v63, %v949_v63 }
 0x15b   : > { %v960_v21 = vmul.f32 %v950_v4, %v950_v4  ;;  %v961_v30 = vmul.f32 %v951_v12, %v951_v12  ;;  %v962_v33 = vmul.f32 %v952_v5, %v952_v5  ;;  %v995_v28 = vmul.f32 %v1649_v59, %v948_v0 }
 0x15c   : > { %1003 = vadd.xlane.f32.xlu0 %v993_v13  ;;  %v953_v24 = vmul.f32 %v927_v20, %v820_v7  ;;  %v935_v26 = vrot.slane %v895_v6, %v2108_v17  ;;  %v996_v31 = vmul.f32 %v1649_v59, %v949_v63  ;;  %v997_v32 = vmul.f32 %v1649_v59, %v950_v4 }
 0x15d   : > { %v998_v35 = vmul.f32 %v1649_v59, %v951_v12  ;;  %v964_v36 = vmul.f32 %v954_v18, %v954_v18  ;;  %v999_v37 = vmul.f32 %v1649_v59, %v952_v5  ;;  %v1001_v38 = vmul.f32 %v1649_v59, %v954_v18 }
 0x15e   : > { %1005 = vadd.xlane.f32.xlu1 %v994_v25  ;;  %v955_v23 = vmul.f32 %v935_v26, %v822_v44  ;;  %v963_v34 = vmul.f32 %v953_v24, %v953_v24  ;;  %v1000_v39 = vmul.f32 %v1649_v59, %v953_v24  ;;  %v1064_v57 = vand.u32 127, %v548_v15 }
 0x160   : > { %968 = vadd.xlane.f32.xlu0 %v957_v22  ;;  %v965_v29 = vmul.f32 %v955_v23, %v955_v23  ;;  %v1002_v40 = vmul.f32 %v1649_v59, %v955_v23  ;;  %v2233_v0 = vsub.s32 %v1064_v57, %v2105_v16 }
 0x162   : > { %972 = vadd.xlane.f32.xlu1 %v959_v27 }
 0x164   : > { %974 = vadd.xlane.f32.xlu0 %v960_v21 }
 0x166   : > { %976 = vadd.xlane.f32.xlu1 %v961_v30 }
 0x168   : > { %978 = vadd.xlane.f32.xlu0 %v962_v33 }
 0x16a   : > { %980 = vadd.xlane.f32.xlu1 %v963_v34 }
 0x16c   : > { %1007 = vadd.xlane.f32.xlu0 %v995_v28 }
 0x16e   : > { %1009 = vadd.xlane.f32.xlu1 %v996_v31 }
 0x170   : > { %1011 = vadd.xlane.f32.xlu0 %v997_v32 }
 0x172   : > { %1013 = vadd.xlane.f32.xlu1 %v998_v35 }
 0x174   : > { %982 = vadd.xlane.f32.xlu0 %v964_v36 }
 0x176   : > { %984 = vadd.xlane.f32.xlu1 %v965_v29 }
 0x178   : > { %1015 = vadd.xlane.f32.xlu0 %v999_v37 }
 0x17a   : > { %1017 = vadd.xlane.f32.xlu1 %v1000_v39 }
 0x17c   : > { %1019 = vadd.xlane.f32.xlu0 %v1001_v38 }
 0x17e   : > { %1021 = vadd.xlane.f32.xlu1 %v1002_v40 }
 0x1e5   : > { %v967_v41 = vpop.xlane.xlu0 %966 }
 0x1e6   : > { %v1023_v43 = vmax.f32 %v967_v41, 1e-24 }
 0x1e7   : > { %v971_v42 = vpop.xlane.xlu1 %970 }
 0x1e8   : > { %v1025_v45 = vmax.f32 %v971_v42, 1e-24  ;;  %1764 = vrsqrt.f32 %v1023_v43 }
 0x1e9   : > { %v1004_v44 = vpop.xlane.xlu0 %1003 }
 0x1ea   : > { %1766 = vrsqrt.f32 %v1025_v45 }
 0x1eb   : > { %v1006_v46 = vpop.xlane.xlu1 %1005 }
 0x1ed   : > { %v969_v47 = vpop.xlane.xlu0 %968 }
 0x1ee   : > { %v1024_v48 = vmax.f32 %v969_v47, 1e-24 }
 0x1ef   : > { %v973_v49 = vpop.xlane.xlu1 %972 }
 0x1f0   : > { %1768 = vrsqrt.f32 %v1024_v48  ;;  %v1026_v50 = vmax.f32 %v973_v49, 1e-24 }
 0x1f1   : > { %v975_v51 = vpop.xlane.xlu0 %974 }
 0x1f2   : > { %1770 = vrsqrt.f32 %v1026_v50  ;;  %v1027_v52 = vmax.f32 %v975_v51, 1e-24  ;;  %v1765_v60 = vpop.eup %1764 }
 0x1f3   : > { %v977_v54 = vpop.xlane.xlu1 %976  ;;  %v2235_v1 = vmul.f32 %v1765_v60, %v1004_v44 }
 0x1f4   : > { %1772 = vrsqrt.f32 %v1027_v52  ;;  %v1028_v56 = vmax.f32 %v977_v54, 1e-24  ;;  %v1767_v62 = vpop.eup %1766  ;;  %v1142_v54 = vsub.s32 2, %v2105_v16 }
 0x1f5   : > { %v979_v58 = vpop.xlane.xlu0 %978  ;;  %v1068_v10 = vrot.slane %v2235_v1, %v2233_v0 }
 0x1f6   : > { %1774 = vrsqrt.f32 %v1028_v56  ;;  %v1029_v61 = vmax.f32 %v979_v58, 1e-24  ;;  %v1146_v56 = vsub.s32 3, %v2105_v16 }
 0x1f7   : > { %v981_v53 = vpop.xlane.xlu1 %980 }
 0x1f8   : > { %v1030_v2 = vmax.f32 %v981_v53, 1e-24  ;;  %1776 = vrsqrt.f32 %v1029_v61 }
 0x1f9   : > { %v1008_v59 = vpop.xlane.xlu0 %1007 }
 0x1fa   : > { %v1769_v3 = vpop.eup %1768  ;;  %v2237_v4 = vmul.f32 %v1767_v62, %v1008_v59  ;;  %1778 = vrsqrt.f32 %v1030_v2  ;;  %v1150_v2 = vsub.s32 4, %v2105_v16 }
 0x1fb   : > { %v2239_v55 = vmul.f32 %v1769_v3, %v1006_v46  ;;  %v1010_v15 = vpop.xlane.xlu1 %1009 }
 0x1fc   : > { %v1771_v8 = vpop.eup %1770  ;;  %v1076_v5 = vrot.slane %v2237_v4, %v2233_v0 }
 0x1fd   : > { %v1072_v11 = vrot.slane %v2239_v55, %v2233_v0  ;;  %v2245_v7 = vmul.f32 %v1771_v8, %v1010_v15  ;;  %v1012_v63 = vpop.xlane.xlu0 %1011 }
 0x1fe   : > { %v1773_v12 = vpop.eup %1772 }
 0x1ff   : > { %v1106_v13 = vsel %vm1105_vm1, %v1072_v11, %v1068_v10  ;;  %v1080_v14 = vrot.slane %v2245_v7, %v2233_v0  ;;  %v2252_v18 = vmul.f32 %v1773_v12, %v1012_v63  ;;  %v1014_v25 = vpop.xlane.xlu1 %1013  ;;  %v1154_v10 = vsub.s32 5, %v2105_v16 }
 0x200   : > { %v1775_v20 = vpop.eup %1774  ;;  %v1108_v6 = vsel %vm1107_vm2, %v1076_v5, %v1106_v13  ;;  %v1158_v5 = vsub.s32 6, %v2105_v16 }
 0x201   : > { %v2255_v22 = vmul.f32 %v1775_v20, %v1014_v25  ;;  %v983_v24 = vpop.xlane.xlu0 %982  ;;  %v1084_v26 = vrot.slane %v2252_v18, %v2233_v0  ;;  %v1110_v23 = vsel %vm1109_vm3, %v1080_v14, %v1108_v6  ;;  %v1162_v6 = vsub.s32 7, %v2105_v16 }
 0x202   : > { %v1031_v27 = vmax.f32 %v983_v24, 1e-24  ;;  %v1777_v33 = vpop.eup %1776 }
 0x203   : > { %v985_v21 = vpop.xlane.xlu1 %984  ;;  %v1088_v34 = vrot.slane %v2255_v22, %v2233_v0  ;;  %v1112_v31 = vsel %vm1111_vm4, %v1084_v26, %v1110_v23 }
 0x204   : > { %1780 = vrsqrt.f32 %v1031_v27  ;;  %v1032_v30 = vmax.f32 %v985_v21, 1e-24  ;;  %v1779_v35 = vpop.eup %1778 }
 0x205   : > { %v1016_v28 = vpop.xlane.xlu0 %1015  ;;  %v1114_v39 = vsel %vm1113_vm5, %v1088_v34, %v1112_v31 }
 0x206   : > { %1782 = vrsqrt.f32 %v1032_v30  ;;  %v2263_v32 = vmul.f32 %v1777_v33, %v1016_v28 }
 0x207   : > { %v1018_v36 = vpop.xlane.xlu1 %1017 }
 0x208   : > { %v1092_v29 = vrot.slane %v2263_v32, %v2233_v0  ;;  %v2267_v37 = vmul.f32 %v1779_v35, %v1018_v36 }
 0x209   : > { %v1020_v44 = vpop.xlane.xlu0 %1019 }
 0x20a   : > { %v1096_v38 = vrot.slane %v2267_v37, %v2233_v0  ;;  %v1116_v40 = vsel %vm1115_vm6, %v1092_v29, %v1114_v39 }
 0x20b   : > { %v1022_v47 = vpop.xlane.xlu1 %1021 }
 0x20c   : > { %v1118_v41 = vsel %vm1117_vm7, %v1096_v38, %v1116_v40 }
 0x20d   : > { %v1123_v42 = vsel %vm1122_vm8, %v1118_v41, -inf }
 0x20e   : > { %v1781_v43 = vpop.eup %1780  ;;  %1124 = vmax.xlane.f32.xlu0 %v1123_v42 }
 0x20f   : > { %v2275_v45 = vmul.f32 %v1781_v43, %v1020_v44 }
 0x210   : > { %v1783_v46 = vpop.eup %1782 }
 0x211   : > { %v1052_v48 = vmul.f32 %v1783_v46, %v1022_v47  ;;  %v1100_v49 = vrot.slane %v2275_v45, %v2233_v0 }
 0x213   : > { %v1104_v50 = vrot.slane %v1052_v48, %v2233_v0 }
 0x215   : > { %v1119_v51 = vsel %vm1105_vm1, %v1104_v50, %v1100_v49 }
 0x216   : > { %v1127_v52 = vsel %vm1126_vm9, %v1119_v51, -inf }
 0x217   : > { %1128 = vmax.xlane.f32.xlu1 %v1127_v52 }
 0x29b   : > { %v1125_v57 = vpop.xlane.xlu0 %1124 }
 0x29c   : > { %v1135_v58 = vrot.slane %v1125_v57, %v2108_v17  ;;  %v1139_v60 = vrot.slane %v1125_v57, %v2114_v19  ;;  %v1143_v61 = vrot.slane %v1125_v57, %v1142_v54  ;;  %v1147_v59 = vrot.slane %v1125_v57, %v1146_v56 }
 0x29d   : > { %v1151_v11 = vrot.slane %v1125_v57, %v1150_v2 }
 0x29e   : > { %v1182_v53 = vsub.f32 %v2235_v1, %v1135_v58  ;;  %v1183_v62 = vsub.f32 %v2239_v55, %v1139_v60  ;;  %v1184_v3 = vsub.f32 %v2237_v4, %v1143_v61  ;;  %v1185_v63 = vsub.f32 %v2245_v7, %v1147_v59 }
 0x29f   : > { %v1155_v4 = vrot.slane %v1125_v57, %v1154_v10  ;;  %v1186_v13 = vsub.f32 %v2252_v18, %v1151_v11  ;;  %v1159_v7 = vrot.slane %v1125_v57, %v1158_v5  ;;  %v1163_v18 = vrot.slane %v1125_v57, %v1162_v6 }
 0x2a0   : > { %v1192_v15 = vmul.f32 1.442695, %v1182_v53  ;;  %v1194_v8 = vmul.f32 1.442695, %v1183_v62  ;;  %v1196_v1 = vmul.f32 1.442695, %v1184_v3 }
 0x2a1   : > { %v1198_v14 = vmul.f32 1.442695, %v1185_v63  ;;  %v1187_v24 = vsub.f32 %v2255_v22, %v1155_v4  ;;  %v1200_v26 = vmul.f32 1.442695, %v1186_v13  ;;  %v1188_v21 = vsub.f32 %v2263_v32, %v1159_v7 }
 0x2a2   : > { %1784 = vpow2.f32 %v1192_v15  ;;  %v1189_v22 = vsub.f32 %v2267_v37, %v1163_v18 }
 0x2a3   : > { %1786 = vpow2.f32 %v1194_v8  ;;  %v1202_v30 = vmul.f32 1.442695, %v1187_v24  ;;  %v1204_v34 = vmul.f32 1.442695, %v1188_v21 }
 0x2a4   : > { %v1129_v55 = vpop.xlane.xlu1 %1128  ;;  %1788 = vpow2.f32 %v1196_v1  ;;  %v1206_v32 = vmul.f32 1.442695, %v1189_v22 }
 0x2a5   : > { %v1171_v12 = vrot.slane %v1129_v55, %v2114_v19  ;;  %1790 = vpow2.f32 %v1198_v14  ;;  %v1167_v28 = vrot.slane %v1129_v55, %v2108_v17 }
 0x2a7   : > { %v1191_v25 = vsub.f32 %v1052_v48, %v1171_v12  ;;  %v1190_v36 = vsub.f32 %v2275_v45, %v1167_v28 }
 0x2a9   : > { %v1210_v20 = vmul.f32 1.442695, %v1191_v25  ;;  %v1208_v37 = vmul.f32 1.442695, %v1190_v36 }
 0x2ab   : > { %1792 = vpow2.f32 %v1210_v20 }
 0x2ac   : > { %v2307_v27 = vpop.eup %1784  ;;  %1794 = vpow2.f32 %v1200_v26 }
 0x2ad   : > { %v2309_v23 = vpop.eup %1786  ;;  %1223 = vperm.xlu0 %1719, %v2307_v27   ;;  %1796 = vpow2.f32 %v1202_v30 }
 0x2ae   : > { %1226 = vperm.xlu1 %1720, %v2309_v23   ;;  %v2316_v33 = vpop.eup %1788  ;;  %1798 = vpow2.f32 %v1204_v34 }
 0x2af   : > { %v2321_v31 = vpop.eup %1790  ;;  %1800 = vpow2.f32 %v1206_v32 }
 0x2b0   : > { %1802 = vpow2.f32 %v1208_v37 }
 0x2b2   : > { %1229 = vperm.xlu1 %1720, %v2316_v33  }
 0x2b5   : > { %v2323_v35 = vpop.eup %1792 }
 0x2b6   : > { %1232 = vperm.xlu1 %1720, %v2321_v31   ;;  %1250 = vperm.xlu0 %1719, %v2323_v35   ;;  %v1795_v29 = vpop.eup %1794 }
 0x2b7   : > { %v1797_v39 = vpop.eup %1796 }
 0x2b8   : > { %v2328_v38 = vpop.eup %1798 }
 0x2b9   : > { %v2331_v40 = vpop.eup %1800 }
 0x2ba   : > { %1235 = vperm.xlu1 %1720, %v1795_v29   ;;  %v2334_v41 = vpop.eup %1802 }
 0x2be   : > { %1238 = vperm.xlu1 %1720, %v1797_v39  }
 0x2c2   : > { %1241 = vperm.xlu1 %1720, %v2328_v38  }
 0x2c6   : > { %1244 = vperm.xlu1 %1720, %v2331_v40  }
 0x2ca   : > { %1247 = vperm.xlu1 %1720, %v2334_v41  }
 0x32c   : > { %v1224_v46 = vpop.permute.xlu0 %1223 }
 0x32d   : > { %v1227_v42 = vpop.permute.xlu1 %1226  ;;  %v1255_v48 = vrot.slane %v1224_v46, %v2233_v0 }
 0x32e   : > { %v1259_v49 = vrot.slane %v1227_v42, %v2233_v0 }
 0x330   : > { %v1292_v58 = vsel %vm1105_vm1, %v1259_v49, %v1255_v48 }
 0x331   : > { %v1230_v43 = vpop.permute.xlu1 %1229 }
 0x332   : > { %v1263_v50 = vrot.slane %v1230_v43, %v2233_v0 }
 0x334   : > { %v1293_v61 = vsel %vm1107_vm2, %v1263_v50, %v1292_v58 }
 0x335   : > { %v1233_v44 = vpop.permute.xlu1 %1232  ;;  %v1251_v11 = vpop.permute.xlu0 %1250 }
 0x336   : > { %v1267_v51 = vrot.slane %v1233_v44, %v2233_v0  ;;  %v1291_v4 = vrot.slane %v1251_v11, %v2233_v0 }
 0x338   : > { %v1294_v62 = vsel %vm1109_vm3, %v1267_v51, %v1293_v61  ;;  %v1485_v61 = vsel %vm1484_vm10, %v2098_v9, 0 }
 0x339   : > { %v1236_v45 = vpop.permute.xlu1 %1235 }
 0x33a   : > { %v1271_v52 = vrot.slane %v1236_v45, %v2233_v0 }
 0x33c   : > { %v1295_v59 = vsel %vm1111_vm4, %v1271_v52, %v1294_v62 }
 0x33d   : > { %v1239_v47 = vpop.permute.xlu1 %1238 }
 0x33e   : > { %v1275_v60 = vrot.slane %v1239_v47, %v2233_v0 }
 0x340   : > { %v1296_v15 = vsel %vm1113_vm5, %v1275_v60, %v1295_v59 }
 0x341   : > { %v1242_v57 = vpop.permute.xlu1 %1241 }
 0x342   : > { %v1279_v53 = vrot.slane %v1242_v57, %v2233_v0 }
 0x344   : > { %v1297_v63 = vsel %vm1115_vm6, %v1279_v53, %v1296_v15  ;;  %v1912_v53 = vmov 0.0  }
 0x345   : > { %v1245_v3 = vpop.permute.xlu1 %1244  ;;  %1657 = vmatprep.subr.bf16.mxu1 %v1912_v53  ;;  %1659 = vmatprep.mubr.msk.bf16.mxu1 %vm1913_vm11, %v1912_v53 }
 0x346   : > { %v1283_v8 = vrot.slane %v1245_v3, %v2233_v0  ;;  %1658 = vmatpush3.bf16.msra.mxu1 %v1485_v61 }
 0x348   : > { %v1298_v1 = vsel %vm1117_vm7, %v1283_v8, %v1297_v63 }
 0x349   : > { %v1248_v55 = vpop.permute.xlu1 %1247  ;;  %v1302_v12 = vsel %vm1122_vm8, %v1298_v1, 0.0 }
 0x34a   : > { %v1287_v13 = vrot.slane %v1248_v55, %v2233_v0  ;;  %1303 = vadd.xlane.f32.xlu1 %v1302_v12 }
 0x34c   : > { %v1299_v14 = vsel %vm1105_vm1, %v1291_v4, %v1287_v13 }
 0x34d   : > { %v1305_v25 = vsel %vm1126_vm9, %v1299_v14, 0.0 }
 0x34e   : > { %1306 = vadd.xlane.f32.xlu0 %v1305_v25 }
 0x3d7   : > { %v1304_v20 = vpop.xlane.xlu1 %1303 }
 0x3d8   : > { %1804 = vrcp.f32 %v1304_v20 }
 0x3db   : > { %v1307_v7 = vpop.xlane.xlu0 %1306 }
 0x3dc   : > { %1806 = vrcp.f32 %v1307_v7 }
 0x3e2   : > { %v1805_v24 = vpop.eup %1804 }
 0x3e3   : > { %v1319_v26 = vrot.slane %v1805_v24, %v2114_v19  ;;  %v1315_v18 = vrot.slane %v1805_v24, %v2108_v17  ;;  %v1323_v21 = vrot.slane %v1805_v24, %v1142_v54  ;;  %v1327_v30 = vrot.slane %v1805_v24, %v1146_v56 }
 0x3e4   : > { %v1331_v22 = vrot.slane %v1805_v24, %v1150_v2  ;;  %v1335_v34 = vrot.slane %v1805_v24, %v1154_v10  ;;  %v1339_v56 = vrot.slane %v1805_v24, %v1158_v5  ;;  %v1343_v2 = vrot.slane %v1805_v24, %v1162_v6 }
 0x3e5   : > { %v1363_v28 = vmul.f32 %v2309_v23, %v1319_v26  ;;  %v1362_v32 = vmul.f32 %v2307_v27, %v1315_v18  ;;  %v1364_v36 = vmul.f32 %v2316_v33, %v1323_v21  ;;  %v1365_v37 = vmul.f32 %v2321_v31, %v1327_v30 }
 0x3e6   : > { %v1366_v54 = vmul.f32 %v1795_v29, %v1331_v22  ;;  %v1367_v44 = vmul.f32 %v1797_v39, %v1335_v34  ;;  %v1807_v47 = vpop.eup %1806  ;;  %v1368_v31 = vmul.f32 %v2328_v38, %v1339_v56  ;;  %v1369_v29 = vmul.f32 %v2331_v40, %v1343_v2 }
 0x3e7   : > { %v1373_v42 = vpack.c.bf16 %v1363_v28, %v1363_v28  ;;  %v1372_v43 = vpack.c.bf16 %v1362_v32, %v1362_v32  ;;  %v1374_v46 = vpack.c.bf16 %v1364_v36, %v1364_v36  ;;  %v1375_v23 = vpack.c.bf16 %v1365_v37, %v1365_v37 }
 0x3e8   : > { %v1376_v27 = vpack.c.bf16 %v1366_v54, %v1366_v54  ;;  %v1377_v33 = vpack.c.bf16 %v1367_v44, %v1367_v44  ;;  %v1347_v5 = vrot.slane %v1807_v47, %v2108_v17  ;;  %v1351_v16 = vrot.slane %v1807_v47, %v2114_v19 }
 0x3e9   : > { %v1393_v45 = vunpack.c.l.b16 %v1373_v42  ;;  %v1392_v10 = vunpack.c.l.b16 %v1372_v43  ;;  %v1394_v39 = vunpack.c.l.b16 %v1374_v46  ;;  %v1395_v48 = vunpack.c.l.b16 %v1375_v23 }
 0x3ea   : > { %v1378_v6 = vpack.c.bf16 %v1368_v31, %v1368_v31  ;;  %v1379_v49 = vpack.c.bf16 %v1369_v29, %v1369_v29  ;;  %v1396_v50 = vunpack.c.l.b16 %v1376_v27  ;;  %v1397_v51 = vunpack.c.l.b16 %v1377_v33 }
 0x3eb   : > { %1406 = vperm.xlu1 %1720, %v1393_v45   ;;  %1403 = vperm.xlu0 %1719, %v1392_v10   ;;  %v1370_v52 = vmul.f32 %v2334_v41, %v1347_v5  ;;  %v1371_v57 = vmul.f32 %v2323_v35, %v1351_v16 }
 0x3ec   : > { %v1398_v38 = vunpack.c.l.b16 %v1378_v6  ;;  %v1399_v40 = vunpack.c.l.b16 %v1379_v49 }
 0x3ed   : > { %v1380_v58 = vpack.c.bf16 %v1370_v52, %v1370_v52  ;;  %v1381_v60 = vpack.c.bf16 %v1371_v57, %v1371_v57 }
 0x3ef   : > { %1409 = vperm.xlu1 %1720, %v1394_v39   ;;  %1412 = vperm.xlu0 %1719, %v1395_v48   ;;  %v1400_v17 = vunpack.c.l.b16 %v1380_v58  ;;  %v1401_v19 = vunpack.c.l.b16 %v1381_v60 }
 0x3f3   : > { %1415 = vperm.xlu1 %1720, %v1396_v50   ;;  %1418 = vperm.xlu0 %1719, %v1397_v51  }
 0x3f7   : > { %1421 = vperm.xlu1 %1720, %v1398_v38   ;;  %1424 = vperm.xlu0 %1719, %v1399_v40  }
 0x3fb   : > { %1427 = vperm.xlu1 %1720, %v1400_v17   ;;  %1430 = vperm.xlu0 %1719, %v1401_v19  }
 0x46a   : > { %v1407_v35 = vpop.permute.xlu1 %1406  ;;  %v1404_v41 = vpop.permute.xlu0 %1403 }
 0x46b   : > { %v1439_v62 = vrot.slane %v1407_v35, %v2233_v0  ;;  %v1435_v59 = vrot.slane %v1404_v41, %v2233_v0 }
 0x46d   : > { %v1472_v11 = vsel %vm1105_vm1, %v1439_v62, %v1435_v59 }
 0x46e   : > { %v1410_v3 = vpop.permute.xlu1 %1409  ;;  %v1413_v15 = vpop.permute.xlu0 %1412 }
 0x46f   : > { %v1443_v8 = vrot.slane %v1410_v3, %v2233_v0  ;;  %v1447_v63 = vrot.slane %v1413_v15, %v2233_v0 }
 0x471   : > { %v1473_v9 = vsel %vm1107_vm2, %v1443_v8, %v1472_v11 }
 0x472   : > { %v1416_v1 = vpop.permute.xlu1 %1415  ;;  %v1419_v55 = vpop.permute.xlu0 %1418  ;;  %v1474_v4 = vsel %vm1109_vm3, %v1447_v63, %v1473_v9 }
 0x473   : > { %v1451_v12 = vrot.slane %v1416_v1, %v2233_v0  ;;  %v1455_v13 = vrot.slane %v1419_v55, %v2233_v0 }
 0x475   : > { %v1475_v14 = vsel %vm1111_vm4, %v1451_v12, %v1474_v4 }
 0x476   : > { %v1422_v25 = vpop.permute.xlu1 %1421  ;;  %v1425_v20 = vpop.permute.xlu0 %1424  ;;  %v1476_v24 = vsel %vm1113_vm5, %v1455_v13, %v1475_v14 }
 0x477   : > { %v1459_v7 = vrot.slane %v1422_v25, %v2233_v0  ;;  %v1463_v26 = vrot.slane %v1425_v20, %v2233_v0 }
 0x479   : > { %v1477_v18 = vsel %vm1115_vm6, %v1459_v7, %v1476_v24 }
 0x47a   : > { %v1428_v21 = vpop.permute.xlu1 %1427  ;;  %v1431_v30 = vpop.permute.xlu0 %1430  ;;  %v1478_v28 = vsel %vm1117_vm7, %v1463_v26, %v1477_v18 }
 0x47b   : > { %v1467_v22 = vrot.slane %v1428_v21, %v2233_v0  ;;  %v1471_v34 = vrot.slane %v1431_v30, %v2233_v0 }
 0x47d   : > { %v1479_v32 = vsel %vm1105_vm1, %v1471_v34, %v1467_v22 }
 0x47e   : > { %v1480_v36 = vpack.c.b16 %v1479_v32, %v1478_v28 }
 0x480   : > { %1660 = vmatmul.mubr.msk.bf16.vlgmr.msra.gmra.mrb[4].mxu1 %vm1122_vm8, %v1480_v36 }
 0x553   : > { %v1521_v37 = vpop.f32.mrb[4].mxu1 }
 0x554   : > { %1528 = vst.msk [vmem:[%s330_s10] sm:$0xff] %vm359_vm0, %v1521_v37  ;;  %v1661_v42 = vpop.f32.mrb[5].mxu1 }
 0x555   : > { %v1524_v43 = vpop.f32.mrb[6].mxu1 }
 0x556   : > { %1530 = vst.msk [vmem:[%s330_s10 + $0x8] sm:$0x3] %vm1529_vm12, %v1524_v43  ;;  %v1662_v0 = vpop.f32.mrb[7].mxu1 }
 0x557 PF: > { %p18_p8 = scmp.ge.s32.totalorder %s1998_s11, 4   ;;  %s2438_s24 = smov %s1896_s25 }
 0x558   : > { %s2439_s25 = smov %s1900_s26  ;;  %s2440_s26 = smov %s2024_s14 }
 0x559   : > { %s2441_s27 = smov %s1998_s11  ;;  %20 = sbr.rel (!%p18_p8) target bundleno = 4 (0x4), region = 95 }
 0x560   :  { %1552 = vsyncpa [#allocation3], 1 }
 0x561   :  { %1554 = vsyncpa [#allocation3 + $0x1], 1 }
 0x562   :  { %1555 = vsyncpa [#allocation5], 1 }

// kernel: tpu_custom_call.1
= control target key start
LH: loop header
LB: loop body
LE: loop exit
PB: predicated region body
PF: predicated region fallthrough
CT: control target
= control target key end

     0   :  { %12 = vsyncpa [#allocation3], 0  ;;  %s2419_s0 = inlined_call_operand.hbm [shape: bf16[2,8,32], index: 0, kind: input, shape index: {}]   ;;  %s2420_s1 = inlined_call_operand.vmem [shape: bf16[2,10,32], index: 1, kind: input, shape index: {}]   ;;  %s2421_s2 = inlined_call_operand.vmem [shape: bf16[32,256], index: 2, kind: input, shape index: {}]   ;;  %s2422_s3 = inlined_call_operand.hbm [shape: bf16[32,512], index: 3, kind: input, shape index: {}]   ;;  %s2423_s4 = inlined_call_operand.vmem [shape: f32[1,256], index: 4, kind: input, shape index: {}]   ;;  %s2424_s5 = inlined_call_operand.vmem [shape: f32[1,256], index: 5, kind: input, shape index: {}]   ;;  %s2425_s6 = inlined_call_operand.vmem [shape: f32[1,128], index: 6, kind: input, shape index: {}]   ;;  %s2426_s7 = inlined_call_operand.vmem [shape: f32[2,10,32], index: 7, kind: output, shape index: {}]  }
   0x1   :  { %14 = vsyncpa [#allocation3 + $0x1], 0 }
   0x2   :  { %15 = vsyncpa [#allocation5], 0  ;;  %s1954_s24 = smov 0   ;;  %s1956_s25 = smov 0  }
   0x3   :  { %s1958_s26 = smov 0   ;;  %s1960_s27 = smov 0  }
   0x4 LB: > { %s1973_s28 = sadd.s32 4294967295, %s1904_s27   ;;  %p41_p0 = scmp.ne.s32.totalorder %s1896_s25, %s1892_s24  ;;  %s1904_s27 = sphi %s1960_s27, %s2441_s27   ;;  %s1900_s26 = sphi %s1958_s26, %s2440_s26   ;;  %s1896_s25 = sphi %s1956_s25, %s2439_s25   ;;  %s1892_s24 = sphi %s1954_s24, %s2438_s24  }
   0x5   : > { %p2427_p1 = scmp.eq.s32.totalorder %s1973_s28, 0  ;;  %p1621_p2 = scmp.ge.s32.totalorder %s1904_s27, 1 }
   0x6   : > { %p209_p3 = scmp.lt.s32.totalorder %s1904_s27, 3  ;;  %s1906_s8 = smov [#allocation4]  }
   0x7   : > { %p1981_p4 = por %p2427_p1, %p41_p0  ;;  %s224_s9 = sshll.u32 %s1906_s8, 4  ;;  %s225_s9 = int_to_ptr.vmem [resolvable:$true] %s224_s9 }
   0x8   : > { %p1985_p5 = pnand %p1621_p2, %p209_p3  ;;  %s1998_s11 = sadd.s32 1, %s1904_s27  }
   0x9   : > { %s2430_s29 = scalar_select %p1981_p4, 1, 0 }
   0xa   : > { %s2431_s30 = scalar_select %p1985_p5, 1, 0 }
   0xb   : > { %p1669_p6 = pneg %p1985_p5  ;;  %s28_s12 = sadd.s32 1, %s1900_s26 }
   0xc   : > { %s25_s13 = ssub.s32 %s1904_s27, %s1998_s11  ;;  %s1808_s16 = scalar_lea.hbm %s2422_s3, 1024 }
   0xd   : > { %p1993_p7 = pnand %p1669_p6, %p2427_p1  ;;  %p1809_p8 = scmp.ne.s32.totalorder %s2422_s3, %s1808_s16 }
   0xe   : > { %p1815_p12 = scmp.lt.u32.totalorder %s1808_s16, %s2422_s3 }
   0xf   : > { %p1810_p9 = pneg %p1993_p7 }
  0x11   : > { %p1811_p10 = pnand %p1810_p9, %p1809_p8 }
  0x13   : > { %p1812_p11 = pneg %p1811_p10 }
  0x15   : > { %p1817_p13 = pnand %p1815_p12, %p1812_p11 }
  0x17   : > { %1820 = shalt.err (!%p1817_p13)
}
  0x18   : > { %s1821_s21 = scalar_lea.vmem %s225_s9, 1024  ;;  %p1829_p6 = scmp.lt.s32.totalorder %s225_s9, %s225_s9 }
  0x19   : > { %p1822_p0 = scmp.ne.s32.totalorder %s225_s9, %s1821_s21  ;;  %p1830_p1 = scmp.lt.s32.totalorder %s1821_s21, %s1821_s21 }
  0x1b   : > { %p1824_p2 = pnand %p1822_p0, %p1810_p9  ;;  %p1831_p4 = por %p1830_p1, %p1829_p6 }
  0x1d   : > { %p1825_p3 = pneg %p1824_p2 }
  0x1f   : > { %p1832_p5 = pnand %p1831_p4, %p1825_p3 }
  0x21   : > { %1835 = shalt.err (!%p1832_p5)
}
  0x22   : > { %s1907_s22 = smov 256   ;;  %s1908_s23 = smov 16  }
  0x23   : > { %1672 = dma.hbm_to_vmem [thread:$0]  (!%p1993_p7), %s2422_s3, 1024, %s225_s9, [#allocation5], %s1907_s22, %s1907_s22, %s1908_s23  }
  0x24   : > { %p26_p8 = scmp.eq.s32.totalorder %s25_s13, 0  ;;  %p35_p9 = scmp.ne.s32.totalorder %s1900_s26, %s1896_s25 }
  0x25   : > { %p36_p1 = scmp.eq.s32.totalorder %s1904_s27, 0  ;;  %p1678_p4 = scmp.lt.s32.totalorder %s1904_s27, 2 }
  0x26   : > { %s2024_s14 = scalar_select %p26_p8, %s1900_s26, %s28_s12  }
  0x27   : > { %p37_p5 = por %p36_p1, %p35_p9  ;;  %s247_s15 = sand.u32 1, %s1900_s26  }
  0x28   : > { %s1624_s16 = sshll.u32 %s247_s15, 2  ;;  %s1625_s17 = sshll.u32 %s1904_s27, 6 }
  0x29   : > { %s2031_s20 = scalar_lea.hbm %s2419_s0, %s1625_s17  ;;  %s251_s9 = scalar_lea.vmem [#allocation2], %s1624_s16 }
  0x2a   : > { %s258_s10 = sshll.u32 %s251_s9, 4  ;;  %p2035_p7 = pnand %p1678_p4, %p37_p5  ;;  %s2033_s10 = int_to_ptr.vmem [resolvable:$true] %s258_s10 }
  0x2b   : > { %s248_s27 = scalar_lea.sflag [#allocation3], %s247_s15  ;;  %s1836_s13 = scalar_lea.hbm %s2031_s20, 64 }
  0x2c   : > { %p1837_p10 = scmp.ne.s32.totalorder %s2031_s20, %s1836_s13  ;;  %p1838_p11 = pneg %p2035_p7 }
  0x2d   : > { %s1841_s23 = scalar_lea.hbm %s2419_s0, 128  ;;  %p1842_p0 = scmp.lt.u32.totalorder %s2031_s20, %s2419_s0 }
  0x2e   : > { %p1839_p12 = pnand %p1838_p11, %p1837_p10  ;;  %p1843_p2 = scmp.lt.u32.totalorder %s1841_s23, %s1836_s13 }
  0x2f   : > { %p1845_p6 = scmp.lt.u32.totalorder %s1836_s13, %s2031_s20 }
  0x30   : > { %p1840_p13 = pneg %p1839_p12  ;;  %p1844_p3 = por %p1843_p2, %p1842_p0 }
  0x32   : > { %p1846_p8 = por %p1845_p6, %p1844_p3 }
  0x34   : > { %p1847_p9 = pnand %p1846_p8, %p1840_p13 }
  0x36   : > { %1850 = shalt.err (!%p1847_p9)
}
  0x37   : > { %s1851_s15 = scalar_lea.vmem %s2033_s10, 64  ;;  %s1909_s16 = smov [#allocation2]  }
  0x38   : > { %p1852_p1 = scmp.ne.s32.totalorder %s2033_s10, %s1851_s15  ;;  %s1856_s17 = sshll.u32 %s1909_s16, 4  ;;  %s1857_s17 = int_to_ptr.vmem [resolvable:$false] %s1856_s17 }
  0x39   : > { %s1858_s18 = scalar_lea.vmem %s1857_s17, 128  ;;  %p1859_p10 = scmp.lt.s32.totalorder %s2033_s10, %s1857_s17 }
  0x3a   : > { %p1854_p4 = pnand %p1852_p1, %p1838_p11  ;;  %p1860_p12 = scmp.lt.s32.totalorder %s1858_s18, %s1851_s15 }
  0x3c   : > { %p1855_p5 = pneg %p1854_p4  ;;  %p1861_p0 = por %p1860_p12, %p1859_p10 }
  0x3e   : > { %p1862_p2 = pnand %p1861_p0, %p1855_p5 }
  0x40   : > { %1865 = shalt.err (!%p1862_p2)
}
  0x41   : > { %1676 = dma.hbm_to_vmem [thread:$0]  (!%p2035_p7), %s2031_s20, 64, %s2033_s10, %s248_s27  }
  0x42   : > { %p2434_p13 = scmp.ne.s32.totalorder %s2431_s30, 0 }
  0x43   : > { %s277_s19 = sand.u32 (!%p2434_p13), 1, %s1896_s25   ;;  %p2435_p11 = scmp.ne.s32.totalorder (!%p2434_p13), %s2430_s29, 0 }
  0x44   : > { %275 = sbr.rel (%p2434_p13) target bundleno = 1367 (0x557), region = 48  ;;  %s2067_s9 = sshll.u32 (!%p2434_p13), %s277_s19, 2 }
  0x45   : > { %s278_s13 = scalar_lea.sflag (!%p2434_p13), [#allocation3], %s277_s19  ;;  %s281_s21 = scalar_lea.vmem (!%p2434_p13), [#allocation2], %s2067_s9 }
  0x4b   : > { %1883 = dma.done.wait (%p2435_p11), %s278_s13, 64  }
  0x4c   : > { %1885 = vsyncadd (%p2435_p11), %s278_s13, 4294967232  ;;  %p2436_p3 = scmp.eq.s32.totalorder %s1973_s28, 0 }
  0x4e   : > { %1887 = dma.done.wait (%p2436_p3), [#allocation5], 1024   ;;  %p2437_p7 = pmov %p2436_p3 }
  0x4f   : > { %p321_p6 = scmp.lt.s32.totalorder %s1973_s28, 1  ;;  %v1910_v0 = vmov 0   ;;  %v1721_v1 = vld [vmem:[%s2421_s2 + $0x4] ss:$8 sps:$4 sm:$0xff]   ;;  %v1725_v3 = vld [vmem:[%s2421_s2] ss:$8 sps:$4 sm:$0xff]   ;;  %v548_v15 = vlaneseq }
  0x50   : > { %1889 = vsyncadd (%p2437_p7), [#allocation5], 4294966272  ;;  %395 = vmatprep.mubr.bf16.mxu0 %v1910_v0  ;;  %492 = vmatprep.mubr.bf16.mxu1 %v1910_v0  ;;  %v1723_v2 = vld [vmem:[#allocation4 + $0x4] ss:$16 sps:$4 sm:$0xff]   ;;  %v1726_v4 = vld [vmem:[#allocation4] ss:$16 sps:$4 sm:$0xff]  }
  0x51   : > { %1720 = vset.pattern.permute.xlu1 %v1910_v0  ;;  %1719 = vset.pattern.permute.xlu0 %v1910_v0  ;;  %s2443_s28 = smov (!%p321_p6, %s1973_s28), 1  ;;  %v1727_v5 = vld [vmem:[%s2421_s2 + $0x14] ss:$8 sps:$4 sm:$0xff]   ;;  %v1731_v7 = vld [vmem:[%s2421_s2 + $0x10] ss:$8 sps:$4 sm:$0xff]   ;;  %vm359_vm0 = vcmask 261120  }
  0x52   : > { %s1653_s29 = sshll.u32 %s2443_s28, 3  ;;  %363 = vmatprep.subr.bf16.mxu0 %v1721_v1  ;;  %460 = vmatprep.subr.bf16.mxu1 %v1723_v2  ;;  %v1729_v6 = vld [vmem:[#allocation4 + $0x24] ss:$16 sps:$4 sm:$0xff]   ;;  %v1732_v8 = vld [vmem:[#allocation4 + $0x20] ss:$16 sps:$4 sm:$0xff]   ;;  %v2105_v16 = vshrl.u32 %v548_v15, 7 }
  0x53   : > { %364 = vmatpush1.bf16.msra.mxu0 %v1725_v3  ;;  %461 = vmatpush1.bf16.msra.mxu1 %v1726_v4  ;;  %s325_s16 = scalar_lea.vmem %s2420_s1, %s1653_s29  ;;  %v2098_v9 = vld [vmem:[%s281_s21] sm:$0xf]  ;;  %v1911_v20 = vmov 1966171168   ;;  %vm1105_vm1 = vcmask 1041409   ;;  %vm1107_vm2 = vcmask 1042434  }
  0x54   : > { %365 = vmatprep.subr.bf16.mxu0 %v1727_v5  ;;  %462 = vmatprep.subr.bf16.mxu1 %v1729_v6  ;;  %v1733_v10 = vld [vmem:[%s325_s16] sm:$0x1f]   ;;  %v2108_v17 = vsub.s32 0, %v2105_v16  ;;  %v2114_v19 = vsub.s32 1, %v2105_v16  ;;  %v593_v21 = vunpack.c.l.s4 %v1911_v20  ;;  %vm1109_vm3 = vcmask 1043459   ;;  %s1654_s30 = sshll.u32 %s2443_s28, 4 }
  0x55   : > { %v1736_v11 = vld [vmem:[#allocation4 + $0xc] ss:$16 sps:$4 sm:$0xff]   ;;  %v1734_v12 = vld [vmem:[#allocation4 + $0x8] ss:$16 sps:$4 sm:$0xff]   ;;  %vm1111_vm4 = vcmask 1044484   ;;  %vm1113_vm5 = vcmask 1045509   ;;  %s330_s10 = scalar_lea.vmem %s2426_s7, %s1654_s30 }
  0x56   : > { %v1739_v13 = vld [vmem:[#allocation4 + $0x2c] ss:$16 sps:$4 sm:$0xff]   ;;  %v1737_v14 = vld [vmem:[#allocation4 + $0x28] ss:$16 sps:$4 sm:$0xff]   ;;  %v594_v24 = vunpack.c.0.s8 %v593_v21  ;;  %vm1115_vm6 = vcmask 1046534   ;;  %vm1117_vm7 = vcmask 1047559  }
  0x57   : > { %366 = vmatpush1.bf16.msra.mxu0 %v1731_v7  ;;  %463 = vmatpush1.bf16.msra.mxu1 %v1732_v8  ;;  %v546_v18 = vld [vmem:[%s2423_s4] sm:$0x3]  ;;  %vm1122_vm8 = vcmask 64512   ;;  %vm1126_vm9 = vcmask 58368   ;;  %vm1484_vm10 = vcmask 1043456   ;;  %vm1913_vm11 = vmmov 0  }
  0x58   : > { %503 = vmatprep.subr.bf16.mxu0 %v1736_v11  ;;  %v551_v22 = vrot.slane %v546_v18, %v2108_v17  ;;  %v555_v23 = vrot.slane %v546_v18, %v2114_v19  ;;  %v2123_v31 = vsub.s32 %v594_v24, %v2105_v16  ;;  %v562_v43 = vld [vmem:[%s2424_s5] sm:$0x3]  ;;  %vm1529_vm12 = vcmask 254976  }
  0x59   : > { %v567_v50 = vrot.slane %v562_v43, %v2108_v17  ;;  %v571_v60 = vrot.slane %v562_v43, %v2114_v19 }
  0x5a   : > { %1637 = vmatmul.mubr.msk.bf16.vlgmr.msra.gmra.mrb[0].mxu0 %vm359_vm0, %v2098_v9  ;;  %1647 = vmatmul.mubr.msk.bf16.vlgmr.msra.gmra.mrb[0].mxu1 %vm359_vm0, %v1733_v10 }
  0x5b   : > { %504 = vmatpush1.bf16.msra.mxu0 %v1734_v12  ;;  %535 = vmatprep.mubr.bf16.mxu0 %v1910_v0 }
  0x5c   : > { %505 = vmatprep.subr.bf16.mxu0 %v1739_v13 }
  0x5f   : > { %506 = vmatpush1.bf16.msra.mxu0 %v1737_v14 }
  0x62   : > { %1648 = vmatmul.mubr.msk.bf16.vlgmr.msra.gmra.mrb[4].mxu0 %vm359_vm0, %v1733_v10 }
 0x12d   : > { %v2118_v25 = vpop.f32.mrb[0].mxu0  ;;  %v494_v26 = vpop.f32.mrb[0].mxu1 }
 0x12e   : > { %v558_v27 = vadd.f32 %v551_v22, %v494_v26  ;;  %v2120_v28 = vpop.f32.mrb[1].mxu0  ;;  %v496_v29 = vpop.f32.mrb[1].mxu1 }
 0x12f   : > { %v559_v30 = vadd.f32 %v555_v23, %v496_v29  ;;  %v401_v32 = vpop.f32.mrb[2].mxu0  ;;  %v498_v33 = vpop.f32.mrb[2].mxu1 }
 0x130   : > { %v560_v34 = vadd.f32 %v551_v22, %v498_v33  ;;  %v402_v35 = vpop.f32.mrb[3].mxu0  ;;  %v500_v36 = vpop.f32.mrb[3].mxu1 }
 0x131   : > { %v590_v37 = vcombine.low %v558_v27, %v559_v30  ;;  %v591_v38 = vcombine.high %v558_v27, %v559_v30  ;;  %v561_v39 = vadd.f32 %v555_v23, %v500_v36 }
 0x133   : > { %v598_v40 = vrot.slane %v590_v37, %v2123_v31  ;;  %v605_v41 = vrot.slane %v591_v38, %v2123_v31  ;;  %v640_v42 = vcombine.low %v560_v34, %v561_v39 }
 0x135   : > { %v606_v44 = vcombine.high %v598_v40, %v598_v40  ;;  %v607_v45 = vcombine.high %v605_v41, %v605_v41  ;;  %v614_v46 = vrot.slane %v598_v40, %v2123_v31  ;;  %v621_v47 = vrot.slane %v605_v41, %v2123_v31  ;;  %v537_v48 = vpop.f32.mrb[4].mxu0 }
 0x136   : > { %v647_v49 = vrot.slane %v640_v42, %v2123_v31  ;;  %v539_v51 = vpop.f32.mrb[5].mxu0  ;;  %v574_v8 = vadd.f32 %v567_v50, %v537_v48 }
 0x137   : > { %v628_v52 = vrot.slane %v606_v44, %v2123_v31  ;;  %v2136_v53 = vrot.slane %v607_v45, %v2123_v31  ;;  %v636_v54 = vcombine.high %v614_v46, %v614_v46  ;;  %v2138_v55 = vcombine.high %v621_v47, %v621_v47  ;;  %v541_v56 = vpop.f32.mrb[6].mxu0 }
 0x138   : > { %v666_v57 = vrot.slane %v614_v46, %v2108_v17  ;;  %v698_v58 = vrot.slane %v621_v47, %v2108_v17  ;;  %v648_v59 = vcombine.high %v647_v49, %v647_v49  ;;  %v543_v61 = vpop.f32.mrb[7].mxu0  ;;  %v655_v12 = vrot.slane %v647_v49, %v2123_v31 }
 0x139   : > { %v638_v62 = vcombine.high %v628_v52, %v628_v52  ;;  %v2145_v63 = vcombine.high %v2136_v53, %v2136_v53  ;;  %v674_v0 = vrot.slane %v628_v52, %v2108_v17  ;;  %v682_v1 = vrot.slane %v636_v54, %v2108_v17 }
 0x13a   : > { %v706_v2 = vrot.slane %v2136_v53, %v2108_v17  ;;  %v714_v3 = vrot.slane %v2138_v55, %v2108_v17  ;;  %v763_v4 = vadd.f32 %v666_v57, %v2118_v25  ;;  %v771_v5 = vadd.f32 %v698_v58, %v2118_v25 }
 0x13b   : > { %v765_v6 = vadd.f32 %v674_v0, %v2118_v25  ;;  %v767_v7 = vadd.f32 %v682_v1, %v2118_v25  ;;  %v690_v13 = vrot.slane %v638_v62, %v2108_v17  ;;  %v702_v14 = vrot.slane %v621_v47, %v2114_v19 }
 0x13c   : > { %v773_v10 = vadd.f32 %v706_v2, %v2118_v25  ;;  %v775_v11 = vadd.f32 %v714_v3, %v2118_v25  ;;  %1740 = vtanh.f32 %v763_v4  ;;  %v2163_v18 = vrot.slane %v648_v59, %v2123_v31 }
 0x13d   : > { %1742 = vtanh.f32 %v765_v6  ;;  %v722_v20 = vrot.slane %v2145_v63, %v2108_v17  ;;  %v730_v21 = vrot.slane %v655_v12, %v2108_v17  ;;  %v575_v22 = vadd.f32 %v571_v60, %v539_v51 }
 0x13e   : > { %1744 = vtanh.f32 %v771_v5  ;;  %v734_v23 = vrot.slane %v655_v12, %v2114_v19  ;;  %v738_v24 = vrot.slane %v2163_v18, %v2108_v17  ;;  %v576_v26 = vadd.f32 %v567_v50, %v541_v56 }
 0x13f   : > { %1746 = vtanh.f32 %v773_v10  ;;  %v779_v27 = vadd.f32 %v730_v21, %v2118_v25  ;;  %v2172_v29 = vadd.f32 %v571_v60, %v543_v61  ;;  %v670_v30 = vrot.slane %v614_v46, %v2114_v19 }
 0x140   : > { %1748 = vtanh.f32 %v775_v11  ;;  %v742_v32 = vrot.slane %v2163_v18, %v2114_v19  ;;  %v781_v33 = vadd.f32 %v738_v24, %v2118_v25  ;;  %v686_v34 = vrot.slane %v636_v54, %v2114_v19 }
 0x141   : > { %1750 = vtanh.f32 %v574_v8  ;;  %v580_v35 = vmul.f32 0.01, %v575_v22  ;;  %v764_v36 = vadd.f32 %v670_v30, %v2120_v28  ;;  %v678_v37 = vrot.slane %v628_v52, %v2114_v19 }
 0x142   : > { %1752 = vtanh.f32 %v779_v27  ;;  %v2182_v38 = vadd.f32 %v686_v34, %v2120_v28  ;;  %v694_v39 = vrot.slane %v638_v62, %v2114_v19  ;;  %v769_v40 = vadd.f32 %v690_v13, %v2118_v25 }
 0x143   : > { %1754 = vtanh.f32 %v781_v33  ;;  %v793_v41 = vmul.f32 0.01, %v764_v36  ;;  %v766_v42 = vadd.f32 %v678_v37, %v2120_v28  ;;  %v772_v43 = vadd.f32 %v702_v14, %v2120_v28 }
 0x144   : > { %1756 = vtanh.f32 %v576_v26  ;;  %v581_v44 = vmul.f32 0.01, %v2172_v29  ;;  %v770_v45 = vadd.f32 %v694_v39, %v2120_v28  ;;  %v710_v46 = vrot.slane %v2136_v53, %v2114_v19 }
 0x145   : > { %1758 = vtanh.f32 %v767_v7  ;;  %v803_v48 = vmax.f32 %v764_v36, %v793_v41  ;;  %v794_v49 = vmul.f32 0.01, %v766_v42  ;;  %v797_v50 = vmul.f32 0.01, %v772_v43 }
 0x146   : > { %v1741_v47 = vpop.eup %1740  ;;  %1760 = vtanh.f32 %v769_v40  ;;  %v582_v52 = vmax.f32 %v575_v22, %v580_v35  ;;  %v795_v54 = vmul.f32 0.01, %v2182_v38  ;;  %v774_v56 = vadd.f32 %v710_v46, %v2120_v28 }
 0x147   : > { %v1743_v51 = vpop.eup %1742  ;;  %v718_v57 = vrot.slane %v2138_v55, %v2114_v19  ;;  %v813_v59 = vmul.f32 %v1741_v47, %v803_v48  ;;  %v804_v60 = vmax.f32 %v766_v42, %v794_v49  ;;  %v807_v61 = vmax.f32 %v772_v43, %v797_v50 }
 0x148   : > { %v1745_v58 = vpop.eup %1744  ;;  %v726_v53 = vrot.slane %v2145_v63, %v2114_v19  ;;  %v796_v0 = vmul.f32 0.01, %v770_v45  ;;  %v798_v1 = vmul.f32 0.01, %v774_v56  ;;  %v777_v3 = vadd.f32 %v722_v20, %v2118_v25 }
 0x149   : > { %v1747_v62 = vpop.eup %1746  ;;  %v776_v2 = vadd.f32 %v718_v57, %v2120_v28  ;;  %v814_v5 = vmul.f32 %v1743_v51, %v804_v60  ;;  %v817_v6 = vmul.f32 %v1745_v58, %v807_v61  ;;  %v780_v55 = vadd.f32 %v734_v23, %v2120_v28 }
 0x14a   : > { %v1749_v4 = vpop.eup %1748  ;;  %v2201_v7 = vadd.f32 %v726_v53, %v2120_v28  ;;  %v808_v10 = vmax.f32 %v774_v56, %v798_v1  ;;  %1762 = vtanh.f32 %v777_v3  ;;  %v782_v63 = vadd.f32 %v742_v32, %v2120_v28 }
 0x14b   : > { %v1751_v8 = vpop.eup %1750  ;;  %v799_v11 = vmul.f32 0.01, %v776_v2  ;;  %v583_v14 = vmax.f32 %v2172_v29, %v581_v44  ;;  %v801_v18 = vmul.f32 0.01, %v780_v55  ;;  %v805_v20 = vmax.f32 %v2182_v38, %v795_v54 }
 0x14c   : > { %v1753_v12 = vpop.eup %1752  ;;  %v584_v13 = vmul.f32 %v1751_v8, %v582_v52  ;;  %v818_v21 = vmul.f32 %v1747_v62, %v808_v10  ;;  %v802_v24 = vmul.f32 0.01, %v782_v63  ;;  %v806_v30 = vmax.f32 %v770_v45, %v796_v0 }
 0x14d   : > { %v1755_v25 = vpop.eup %1754  ;;  %v809_v22 = vmax.f32 %v776_v2, %v799_v11  ;;  %v800_v33 = vmul.f32 0.01, %v2201_v7  ;;  %v811_v35 = vmax.f32 %v780_v55, %v801_v18 }
 0x14e   : > { %v1757_v26 = vpop.eup %1756  ;;  %v825_v27 = vcombine.high %v584_v13, %v584_v13  ;;  %v832_v23 = vrot.slane %v584_v13, %v2123_v31  ;;  %v812_v36 = vmax.f32 %v782_v63, %v802_v24 }
 0x14f   : > { %v1759_v34 = vpop.eup %1758  ;;  %v585_v28 = vmul.f32 %v1757_v26, %v583_v14  ;;  %v819_v32 = vmul.f32 %v1749_v4, %v809_v22  ;;  %v821_v43 = vmul.f32 %v1753_v12, %v811_v35  ;;  %v810_v53 = vmax.f32 %v2201_v7, %v800_v33 }
 0x150   : > { %v1761_v29 = vpop.eup %1760  ;;  %v839_v37 = vrot.slane %v825_v27, %v2123_v31  ;;  %v840_v39 = vcombine.high %v832_v23, %v832_v23  ;;  %v848_v38 = vrot.slane %v832_v23, %v2123_v31  ;;  %v815_v40 = vmul.f32 %v1759_v34, %v805_v20 }
 0x151   : > { %v880_v41 = vrot.slane %v585_v28, %v2123_v31  ;;  %v816_v42 = vmul.f32 %v1761_v29, %v806_v30  ;;  %v822_v44 = vmul.f32 %v1755_v25, %v812_v36 }
 0x152   : > { %v899_v45 = vrot.slane %v848_v38, %v2108_v17  ;;  %v870_v46 = vcombine.high %v848_v38, %v848_v38  ;;  %v862_v47 = vrot.slane %v840_v39, %v2123_v31  ;;  %v855_v48 = vrot.slane %v839_v37, %v2123_v31 }
 0x153   : > { %v841_v49 = vcombine.high %v839_v37, %v839_v37  ;;  %v888_v50 = vrot.slane %v880_v41, %v2123_v31  ;;  %v881_v10 = vcombine.high %v880_v41, %v880_v41 }
 0x154   : > { %v946_v51 = vmul.f32 %v899_v45, %v813_v59  ;;  %v907_v52 = vrot.slane %v870_v46, %v2108_v17  ;;  %v903_v54 = vrot.slane %v862_v47, %v2108_v17  ;;  %v872_v56 = vcombine.high %v862_v47, %v862_v47  ;;  %v1763_v57 = vpop.eup %1762  ;;  %v1649_v59 = vld [vmem:[%s2425_s6] ss:$0 sm:$0xff] }
 0x155   : > { %v915_v58 = vrot.slane %v855_v48, %v2108_v17  ;;  %v869_v60 = vrot.slane %v841_v49, %v2123_v31  ;;  %v871_v61 = vcombine.high %v855_v48, %v855_v48  ;;  %v931_v2 = vrot.slane %v888_v50, %v2108_v17 }
 0x156   : > { %v956_v62 = vmul.f32 %v946_v51, %v946_v51  ;;  %v948_v0 = vmul.f32 %v907_v52, %v815_v40  ;;  %v947_v1 = vmul.f32 %v903_v54, %v814_v5  ;;  %v911_v3 = vrot.slane %v872_v56, %v2108_v17 }
 0x157   : > { %v950_v4 = vmul.f32 %v915_v58, %v817_v6  ;;  %v919_v55 = vrot.slane %v869_v60, %v2108_v17  ;;  %v923_v8 = vrot.slane %v871_v61, %v2108_v17  ;;  %v820_v7 = vmul.f32 %v1763_v57, %v810_v53 }
 0x158   : > { %966 = vadd.xlane.f32.xlu0 %v956_v62  ;;  %v958_v11 = vmul.f32 %v948_v0, %v948_v0  ;;  %v949_v63 = vmul.f32 %v911_v3, %v816_v42  ;;  %v993_v13 = vmul.f32 %v1649_v59, %v946_v51  ;;  %v873_v14 = vcombine.high %v869_v60, %v869_v60 }
 0x159   : > { %v951_v12 = vmul.f32 %v919_v55, %v818_v21  ;;  %v952_v5 = vmul.f32 %v923_v8, %v819_v32  ;;  %v954_v18 = vmul.f32 %v931_v2, %v821_v43  ;;  %v994_v25 = vmul.f32 %v1649_v59, %v947_v1 }
 0x15a   : > { %970 = vadd.xlane.f32.xlu1 %v958_v11  ;;  %v927_v20 = vrot.slane %v873_v14, %v2108_v17  ;;  %v895_v6 = vrot.slane %v881_v10, %v2123_v31  ;;  %v957_v22 = vmul.f32 %v947_v1, %v947_v1  ;;  %v959_v27 = vmul.f32 %v949_v63, %v949_v63 }
 0x15b   : > { %v960_v21 = vmul.f32 %v950_v4, %v950_v4  ;;  %v961_v30 = vmul.f32 %v951_v12, %v951_v12  ;;  %v962_v33 = vmul.f32 %v952_v5, %v952_v5  ;;  %v995_v28 = vmul.f32 %v1649_v59, %v948_v0 }
 0x15c   : > { %1003 = vadd.xlane.f32.xlu0 %v993_v13  ;;  %v953_v24 = vmul.f32 %v927_v20, %v820_v7  ;;  %v935_v26 = vrot.slane %v895_v6, %v2108_v17  ;;  %v996_v31 = vmul.f32 %v1649_v59, %v949_v63  ;;  %v997_v32 = vmul.f32 %v1649_v59, %v950_v4 }
 0x15d   : > { %v998_v35 = vmul.f32 %v1649_v59, %v951_v12  ;;  %v964_v36 = vmul.f32 %v954_v18, %v954_v18  ;;  %v999_v37 = vmul.f32 %v1649_v59, %v952_v5  ;;  %v1001_v38 = vmul.f32 %v1649_v59, %v954_v18 }
 0x15e   : > { %1005 = vadd.xlane.f32.xlu1 %v994_v25  ;;  %v955_v23 = vmul.f32 %v935_v26, %v822_v44  ;;  %v963_v34 = vmul.f32 %v953_v24, %v953_v24  ;;  %v1000_v39 = vmul.f32 %v1649_v59, %v953_v24  ;;  %v1064_v57 = vand.u32 127, %v548_v15 }
 0x160   : > { %968 = vadd.xlane.f32.xlu0 %v957_v22  ;;  %v965_v29 = vmul.f32 %v955_v23, %v955_v23  ;;  %v1002_v40 = vmul.f32 %v1649_v59, %v955_v23  ;;  %v2233_v0 = vsub.s32 %v1064_v57, %v2105_v16 }
 0x162   : > { %972 = vadd.xlane.f32.xlu1 %v959_v27 }
 0x164   : > { %974 = vadd.xlane.f32.xlu0 %v960_v21 }
 0x166   : > { %976 = vadd.xlane.f32.xlu1 %v961_v30 }
 0x168   : > { %978 = vadd.xlane.f32.xlu0 %v962_v33 }
 0x16a   : > { %980 = vadd.xlane.f32.xlu1 %v963_v34 }
 0x16c   : > { %1007 = vadd.xlane.f32.xlu0 %v995_v28 }
 0x16e   : > { %1009 = vadd.xlane.f32.xlu1 %v996_v31 }
 0x170   : > { %1011 = vadd.xlane.f32.xlu0 %v997_v32 }
 0x172   : > { %1013 = vadd.xlane.f32.xlu1 %v998_v35 }
 0x174   : > { %982 = vadd.xlane.f32.xlu0 %v964_v36 }
 0x176   : > { %984 = vadd.xlane.f32.xlu1 %v965_v29 }
 0x178   : > { %1015 = vadd.xlane.f32.xlu0 %v999_v37 }
 0x17a   : > { %1017 = vadd.xlane.f32.xlu1 %v1000_v39 }
 0x17c   : > { %1019 = vadd.xlane.f32.xlu0 %v1001_v38 }
 0x17e   : > { %1021 = vadd.xlane.f32.xlu1 %v1002_v40 }
 0x1e5   : > { %v967_v41 = vpop.xlane.xlu0 %966 }
 0x1e6   : > { %v1023_v43 = vmax.f32 %v967_v41, 1e-24 }
 0x1e7   : > { %v971_v42 = vpop.xlane.xlu1 %970 }
 0x1e8   : > { %v1025_v45 = vmax.f32 %v971_v42, 1e-24  ;;  %1764 = vrsqrt.f32 %v1023_v43 }
 0x1e9   : > { %v1004_v44 = vpop.xlane.xlu0 %1003 }
 0x1ea   : > { %1766 = vrsqrt.f32 %v1025_v45 }
 0x1eb   : > { %v1006_v46 = vpop.xlane.xlu1 %1005 }
 0x1ed   : > { %v969_v47 = vpop.xlane.xlu0 %968 }
 0x1ee   : > { %v1024_v48 = vmax.f32 %v969_v47, 1e-24 }
 0x1ef   : > { %v973_v49 = vpop.xlane.xlu1 %972 }
 0x1f0   : > { %1768 = vrsqrt.f32 %v1024_v48  ;;  %v1026_v50 = vmax.f32 %v973_v49, 1e-24 }
 0x1f1   : > { %v975_v51 = vpop.xlane.xlu0 %974 }
 0x1f2   : > { %1770 = vrsqrt.f32 %v1026_v50  ;;  %v1027_v52 = vmax.f32 %v975_v51, 1e-24  ;;  %v1765_v60 = vpop.eup %1764 }
 0x1f3   : > { %v977_v54 = vpop.xlane.xlu1 %976  ;;  %v2235_v1 = vmul.f32 %v1765_v60, %v1004_v44 }
 0x1f4   : > { %1772 = vrsqrt.f32 %v1027_v52  ;;  %v1028_v56 = vmax.f32 %v977_v54, 1e-24  ;;  %v1767_v62 = vpop.eup %1766  ;;  %v1142_v54 = vsub.s32 2, %v2105_v16 }
 0x1f5   : > { %v979_v58 = vpop.xlane.xlu0 %978  ;;  %v1068_v10 = vrot.slane %v2235_v1, %v2233_v0 }
 0x1f6   : > { %1774 = vrsqrt.f32 %v1028_v56  ;;  %v1029_v61 = vmax.f32 %v979_v58, 1e-24  ;;  %v1146_v56 = vsub.s32 3, %v2105_v16 }
 0x1f7   : > { %v981_v53 = vpop.xlane.xlu1 %980 }
 0x1f8   : > { %v1030_v2 = vmax.f32 %v981_v53, 1e-24  ;;  %1776 = vrsqrt.f32 %v1029_v61 }
 0x1f9   : > { %v1008_v59 = vpop.xlane.xlu0 %1007 }
 0x1fa   : > { %v1769_v3 = vpop.eup %1768  ;;  %v2237_v4 = vmul.f32 %v1767_v62, %v1008_v59  ;;  %1778 = vrsqrt.f32 %v1030_v2  ;;  %v1150_v2 = vsub.s32 4, %v2105_v16 }
 0x1fb   : > { %v2239_v55 = vmul.f32 %v1769_v3, %v1006_v46  ;;  %v1010_v15 = vpop.xlane.xlu1 %1009 }
 0x1fc   : > { %v1771_v8 = vpop.eup %1770  ;;  %v1076_v5 = vrot.slane %v2237_v4, %v2233_v0 }
 0x1fd   : > { %v1072_v11 = vrot.slane %v2239_v55, %v2233_v0  ;;  %v2245_v7 = vmul.f32 %v1771_v8, %v1010_v15  ;;  %v1012_v63 = vpop.xlane.xlu0 %1011 }
 0x1fe   : > { %v1773_v12 = vpop.eup %1772 }
 0x1ff   : > { %v1106_v13 = vsel %vm1105_vm1, %v1072_v11, %v1068_v10  ;;  %v1080_v14 = vrot.slane %v2245_v7, %v2233_v0  ;;  %v2252_v18 = vmul.f32 %v1773_v12, %v1012_v63  ;;  %v1014_v25 = vpop.xlane.xlu1 %1013  ;;  %v1154_v10 = vsub.s32 5, %v2105_v16 }
 0x200   : > { %v1775_v20 = vpop.eup %1774  ;;  %v1108_v6 = vsel %vm1107_vm2, %v1076_v5, %v1106_v13  ;;  %v1158_v5 = vsub.s32 6, %v2105_v16 }
 0x201   : > { %v2255_v22 = vmul.f32 %v1775_v20, %v1014_v25  ;;  %v983_v24 = vpop.xlane.xlu0 %982  ;;  %v1084_v26 = vrot.slane %v2252_v18, %v2233_v0  ;;  %v1110_v23 = vsel %vm1109_vm3, %v1080_v14, %v1108_v6  ;;  %v1162_v6 = vsub.s32 7, %v2105_v16 }
 0x202   : > { %v1031_v27 = vmax.f32 %v983_v24, 1e-24  ;;  %v1777_v33 = vpop.eup %1776 }
 0x203   : > { %v985_v21 = vpop.xlane.xlu1 %984  ;;  %v1088_v34 = vrot.slane %v2255_v22, %v2233_v0  ;;  %v1112_v31 = vsel %vm1111_vm4, %v1084_v26, %v1110_v23 }
 0x204   : > { %1780 = vrsqrt.f32 %v1031_v27  ;;  %v1032_v30 = vmax.f32 %v985_v21, 1e-24  ;;  %v1779_v35 = vpop.eup %1778 }
 0x205   : > { %v1016_v28 = vpop.xlane.xlu0 %1015  ;;  %v1114_v39 = vsel %vm1113_vm5, %v1088_v34, %v1112_v31 }
 0x206   : > { %1782 = vrsqrt.f32 %v1032_v30  ;;  %v2263_v32 = vmul.f32 %v1777_v33, %v1016_v28 }
 0x207   : > { %v1018_v36 = vpop.xlane.xlu1 %1017 }
 0x208   : > { %v1092_v29 = vrot.slane %v2263_v32, %v2233_v0  ;;  %v2267_v37 = vmul.f32 %v1779_v35, %v1018_v36 }
 0x209   : > { %v1020_v44 = vpop.xlane.xlu0 %1019 }
 0x20a   : > { %v1096_v38 = vrot.slane %v2267_v37, %v2233_v0  ;;  %v1116_v40 = vsel %vm1115_vm6, %v1092_v29, %v1114_v39 }
 0x20b   : > { %v1022_v47 = vpop.xlane.xlu1 %1021 }
 0x20c   : > { %v1118_v41 = vsel %vm1117_vm7, %v1096_v38, %v1116_v40 }
 0x20d   : > { %v1123_v42 = vsel %vm1122_vm8, %v1118_v41, -inf }
 0x20e   : > { %v1781_v43 = vpop.eup %1780  ;;  %1124 = vmax.xlane.f32.xlu0 %v1123_v42 }
 0x20f   : > { %v2275_v45 = vmul.f32 %v1781_v43, %v1020_v44 }
 0x210   : > { %v1783_v46 = vpop.eup %1782 }
 0x211   : > { %v1052_v48 = vmul.f32 %v1783_v46, %v1022_v47  ;;  %v1100_v49 = vrot.slane %v2275_v45, %v2233_v0 }
 0x213   : > { %v1104_v50 = vrot.slane %v1052_v48, %v2233_v0 }
 0x215   : > { %v1119_v51 = vsel %vm1105_vm1, %v1104_v50, %v1100_v49 }
 0x216   : > { %v1127_v52 = vsel %vm1126_vm9, %v1119_v51, -inf }
 0x217   : > { %1128 = vmax.xlane.f32.xlu1 %v1127_v52 }
 0x29b   : > { %v1125_v57 = vpop.xlane.xlu0 %1124 }
 0x29c   : > { %v1135_v58 = vrot.slane %v1125_v57, %v2108_v17  ;;  %v1139_v60 = vrot.slane %v1125_v57, %v2114_v19  ;;  %v1143_v61 = vrot.slane %v1125_v57, %v1142_v54  ;;  %v1147_v59 = vrot.slane %v1125_v57, %v1146_v56 }
 0x29d   : > { %v1151_v11 = vrot.slane %v1125_v57, %v1150_v2 }
 0x29e   : > { %v1182_v53 = vsub.f32 %v2235_v1, %v1135_v58  ;;  %v1183_v62 = vsub.f32 %v2239_v55, %v1139_v60  ;;  %v1184_v3 = vsub.f32 %v2237_v4, %v1143_v61  ;;  %v1185_v63 = vsub.f32 %v2245_v7, %v1147_v59 }
 0x29f   : > { %v1155_v4 = vrot.slane %v1125_v57, %v1154_v10  ;;  %v1186_v13 = vsub.f32 %v2252_v18, %v1151_v11  ;;  %v1159_v7 = vrot.slane %v1125_v57, %v1158_v5  ;;  %v1163_v18 = vrot.slane %v1125_v57, %v1162_v6 }
 0x2a0   : > { %v1192_v15 = vmul.f32 1.442695, %v1182_v53  ;;  %v1194_v8 = vmul.f32 1.442695, %v1183_v62  ;;  %v1196_v1 = vmul.f32 1.442695, %v1184_v3 }
 0x2a1   : > { %v1198_v14 = vmul.f32 1.442695, %v1185_v63  ;;  %v1187_v24 = vsub.f32 %v2255_v22, %v1155_v4  ;;  %v1200_v26 = vmul.f32 1.442695, %v1186_v13  ;;  %v1188_v21 = vsub.f32 %v2263_v32, %v1159_v7 }
 0x2a2   : > { %1784 = vpow2.f32 %v1192_v15  ;;  %v1189_v22 = vsub.f32 %v2267_v37, %v1163_v18 }
 0x2a3   : > { %1786 = vpow2.f32 %v1194_v8  ;;  %v1202_v30 = vmul.f32 1.442695, %v1187_v24  ;;  %v1204_v34 = vmul.f32 1.442695, %v1188_v21 }
 0x2a4   : > { %v1129_v55 = vpop.xlane.xlu1 %1128  ;;  %1788 = vpow2.f32 %v1196_v1  ;;  %v1206_v32 = vmul.f32 1.442695, %v1189_v22 }
 0x2a5   : > { %v1171_v12 = vrot.slane %v1129_v55, %v2114_v19  ;;  %1790 = vpow2.f32 %v1198_v14  ;;  %v1167_v28 = vrot.slane %v1129_v55, %v2108_v17 }
 0x2a7   : > { %v1191_v25 = vsub.f32 %v1052_v48, %v1171_v12  ;;  %v1190_v36 = vsub.f32 %v2275_v45, %v1167_v28 }
 0x2a9   : > { %v1210_v20 = vmul.f32 1.442695, %v1191_v25  ;;  %v1208_v37 = vmul.f32 1.442695, %v1190_v36 }
 0x2ab   : > { %1792 = vpow2.f32 %v1210_v20 }
 0x2ac   : > { %v2307_v27 = vpop.eup %1784  ;;  %1794 = vpow2.f32 %v1200_v26 }
 0x2ad   : > { %v2309_v23 = vpop.eup %1786  ;;  %1223 = vperm.xlu0 %1719, %v2307_v27   ;;  %1796 = vpow2.f32 %v1202_v30 }
 0x2ae   : > { %1226 = vperm.xlu1 %1720, %v2309_v23   ;;  %v2316_v33 = vpop.eup %1788  ;;  %1798 = vpow2.f32 %v1204_v34 }
 0x2af   : > { %v2321_v31 = vpop.eup %1790  ;;  %1800 = vpow2.f32 %v1206_v32 }
 0x2b0   : > { %1802 = vpow2.f32 %v1208_v37 }
 0x2b2   : > { %1229 = vperm.xlu1 %1720, %v2316_v33  }
 0x2b5   : > { %v2323_v35 = vpop.eup %1792 }
 0x2b6   : > { %1232 = vperm.xlu1 %1720, %v2321_v31   ;;  %1250 = vperm.xlu0 %1719, %v2323_v35   ;;  %v1795_v29 = vpop.eup %1794 }
 0x2b7   : > { %v1797_v39 = vpop.eup %1796 }
 0x2b8   : > { %v2328_v38 = vpop.eup %1798 }
 0x2b9   : > { %v2331_v40 = vpop.eup %1800 }
 0x2ba   : > { %1235 = vperm.xlu1 %1720, %v1795_v29   ;;  %v2334_v41 = vpop.eup %1802 }
 0x2be   : > { %1238 = vperm.xlu1 %1720, %v1797_v39  }
 0x2c2   : > { %1241 = vperm.xlu1 %1720, %v2328_v38  }
 0x2c6   : > { %1244 = vperm.xlu1 %1720, %v2331_v40  }
 0x2ca   : > { %1247 = vperm.xlu1 %1720, %v2334_v41  }
 0x32c   : > { %v1224_v46 = vpop.permute.xlu0 %1223 }
 0x32d   : > { %v1227_v42 = vpop.permute.xlu1 %1226  ;;  %v1255_v48 = vrot.slane %v1224_v46, %v2233_v0 }
 0x32e   : > { %v1259_v49 = vrot.slane %v1227_v42, %v2233_v0 }
 0x330   : > { %v1292_v58 = vsel %vm1105_vm1, %v1259_v49, %v1255_v48 }
 0x331   : > { %v1230_v43 = vpop.permute.xlu1 %1229 }
 0x332   : > { %v1263_v50 = vrot.slane %v1230_v43, %v2233_v0 }
 0x334   : > { %v1293_v61 = vsel %vm1107_vm2, %v1263_v50, %v1292_v58 }
 0x335   : > { %v1233_v44 = vpop.permute.xlu1 %1232  ;;  %v1251_v11 = vpop.permute.xlu0 %1250 }
 0x336   : > { %v1267_v51 = vrot.slane %v1233_v44, %v2233_v0  ;;  %v1291_v4 = vrot.slane %v1251_v11, %v2233_v0 }
 0x338   : > { %v1294_v62 = vsel %vm1109_vm3, %v1267_v51, %v1293_v61  ;;  %v1485_v61 = vsel %vm1484_vm10, %v2098_v9, 0 }
 0x339   : > { %v1236_v45 = vpop.permute.xlu1 %1235 }
 0x33a   : > { %v1271_v52 = vrot.slane %v1236_v45, %v2233_v0 }
 0x33c   : > { %v1295_v59 = vsel %vm1111_vm4, %v1271_v52, %v1294_v62 }
 0x33d   : > { %v1239_v47 = vpop.permute.xlu1 %1238 }
 0x33e   : > { %v1275_v60 = vrot.slane %v1239_v47, %v2233_v0 }
 0x340   : > { %v1296_v15 = vsel %vm1113_vm5, %v1275_v60, %v1295_v59 }
 0x341   : > { %v1242_v57 = vpop.permute.xlu1 %1241 }
 0x342   : > { %v1279_v53 = vrot.slane %v1242_v57, %v2233_v0 }
 0x344   : > { %v1297_v63 = vsel %vm1115_vm6, %v1279_v53, %v1296_v15  ;;  %v1912_v53 = vmov 0.0  }
 0x345   : > { %v1245_v3 = vpop.permute.xlu1 %1244  ;;  %1657 = vmatprep.subr.bf16.mxu1 %v1912_v53  ;;  %1659 = vmatprep.mubr.msk.bf16.mxu1 %vm1913_vm11, %v1912_v53 }
 0x346   : > { %v1283_v8 = vrot.slane %v1245_v3, %v2233_v0  ;;  %1658 = vmatpush3.bf16.msra.mxu1 %v1485_v61 }
 0x348   : > { %v1298_v1 = vsel %vm1117_vm7, %v1283_v8, %v1297_v63 }
 0x349   : > { %v1248_v55 = vpop.permute.xlu1 %1247  ;;  %v1302_v12 = vsel %vm1122_vm8, %v1298_v1, 0.0 }
 0x34a   : > { %v1287_v13 = vrot.slane %v1248_v55, %v2233_v0  ;;  %1303 = vadd.xlane.f32.xlu1 %v1302_v12 }
 0x34c   : > { %v1299_v14 = vsel %vm1105_vm1, %v1291_v4, %v1287_v13 }
 0x34d   : > { %v1305_v25 = vsel %vm1126_vm9, %v1299_v14, 0.0 }
 0x34e   : > { %1306 = vadd.xlane.f32.xlu0 %v1305_v25 }
 0x3d7   : > { %v1304_v20 = vpop.xlane.xlu1 %1303 }
 0x3d8   : > { %1804 = vrcp.f32 %v1304_v20 }
 0x3db   : > { %v1307_v7 = vpop.xlane.xlu0 %1306 }
 0x3dc   : > { %1806 = vrcp.f32 %v1307_v7 }
 0x3e2   : > { %v1805_v24 = vpop.eup %1804 }
 0x3e3   : > { %v1319_v26 = vrot.slane %v1805_v24, %v2114_v19  ;;  %v1315_v18 = vrot.slane %v1805_v24, %v2108_v17  ;;  %v1323_v21 = vrot.slane %v1805_v24, %v1142_v54  ;;  %v1327_v30 = vrot.slane %v1805_v24, %v1146_v56 }
 0x3e4   : > { %v1331_v22 = vrot.slane %v1805_v24, %v1150_v2  ;;  %v1335_v34 = vrot.slane %v1805_v24, %v1154_v10  ;;  %v1339_v56 = vrot.slane %v1805_v24, %v1158_v5  ;;  %v1343_v2 = vrot.slane %v1805_v24, %v1162_v6 }
 0x3e5   : > { %v1363_v28 = vmul.f32 %v2309_v23, %v1319_v26  ;;  %v1362_v32 = vmul.f32 %v2307_v27, %v1315_v18  ;;  %v1364_v36 = vmul.f32 %v2316_v33, %v1323_v21  ;;  %v1365_v37 = vmul.f32 %v2321_v31, %v1327_v30 }
 0x3e6   : > { %v1366_v54 = vmul.f32 %v1795_v29, %v1331_v22  ;;  %v1367_v44 = vmul.f32 %v1797_v39, %v1335_v34  ;;  %v1807_v47 = vpop.eup %1806  ;;  %v1368_v31 = vmul.f32 %v2328_v38, %v1339_v56  ;;  %v1369_v29 = vmul.f32 %v2331_v40, %v1343_v2 }
 0x3e7   : > { %v1373_v42 = vpack.c.bf16 %v1363_v28, %v1363_v28  ;;  %v1372_v43 = vpack.c.bf16 %v1362_v32, %v1362_v32  ;;  %v1374_v46 = vpack.c.bf16 %v1364_v36, %v1364_v36  ;;  %v1375_v23 = vpack.c.bf16 %v1365_v37, %v1365_v37 }
 0x3e8   : > { %v1376_v27 = vpack.c.bf16 %v1366_v54, %v1366_v54  ;;  %v1377_v33 = vpack.c.bf16 %v1367_v44, %v1367_v44  ;;  %v1347_v5 = vrot.slane %v1807_v47, %v2108_v17  ;;  %v1351_v16 = vrot.slane %v1807_v47, %v2114_v19 }
 0x3e9   : > { %v1393_v45 = vunpack.c.l.b16 %v1373_v42  ;;  %v1392_v10 = vunpack.c.l.b16 %v1372_v43  ;;  %v1394_v39 = vunpack.c.l.b16 %v1374_v46  ;;  %v1395_v48 = vunpack.c.l.b16 %v1375_v23 }
 0x3ea   : > { %v1378_v6 = vpack.c.bf16 %v1368_v31, %v1368_v31  ;;  %v1379_v49 = vpack.c.bf16 %v1369_v29, %v1369_v29  ;;  %v1396_v50 = vunpack.c.l.b16 %v1376_v27  ;;  %v1397_v51 = vunpack.c.l.b16 %v1377_v33 }
 0x3eb   : > { %1406 = vperm.xlu1 %1720, %v1393_v45   ;;  %1403 = vperm.xlu0 %1719, %v1392_v10   ;;  %v1370_v52 = vmul.f32 %v2334_v41, %v1347_v5  ;;  %v1371_v57 = vmul.f32 %v2323_v35, %v1351_v16 }
 0x3ec   : > { %v1398_v38 = vunpack.c.l.b16 %v1378_v6  ;;  %v1399_v40 = vunpack.c.l.b16 %v1379_v49 }
 0x3ed   : > { %v1380_v58 = vpack.c.bf16 %v1370_v52, %v1370_v52  ;;  %v1381_v60 = vpack.c.bf16 %v1371_v57, %v1371_v57 }
 0x3ef   : > { %1409 = vperm.xlu1 %1720, %v1394_v39   ;;  %1412 = vperm.xlu0 %1719, %v1395_v48   ;;  %v1400_v17 = vunpack.c.l.b16 %v1380_v58  ;;  %v1401_v19 = vunpack.c.l.b16 %v1381_v60 }
 0x3f3   : > { %1415 = vperm.xlu1 %1720, %v1396_v50   ;;  %1418 = vperm.xlu0 %1719, %v1397_v51  }
 0x3f7   : > { %1421 = vperm.xlu1 %1720, %v1398_v38   ;;  %1424 = vperm.xlu0 %1719, %v1399_v40  }
 0x3fb   : > { %1427 = vperm.xlu1 %1720, %v1400_v17   ;;  %1430 = vperm.xlu0 %1719, %v1401_v19  }
 0x46a   : > { %v1407_v35 = vpop.permute.xlu1 %1406  ;;  %v1404_v41 = vpop.permute.xlu0 %1403 }
 0x46b   : > { %v1439_v62 = vrot.slane %v1407_v35, %v2233_v0  ;;  %v1435_v59 = vrot.slane %v1404_v41, %v2233_v0 }
 0x46d   : > { %v1472_v11 = vsel %vm1105_vm1, %v1439_v62, %v1435_v59 }
 0x46e   : > { %v1410_v3 = vpop.permute.xlu1 %1409  ;;  %v1413_v15 = vpop.permute.xlu0 %1412 }
 0x46f   : > { %v1443_v8 = vrot.slane %v1410_v3, %v2233_v0  ;;  %v1447_v63 = vrot.slane %v1413_v15, %v2233_v0 }
 0x471   : > { %v1473_v9 = vsel %vm1107_vm2, %v1443_v8, %v1472_v11 }
 0x472   : > { %v1416_v1 = vpop.permute.xlu1 %1415  ;;  %v1419_v55 = vpop.permute.xlu0 %1418  ;;  %v1474_v4 = vsel %vm1109_vm3, %v1447_v63, %v1473_v9 }
 0x473   : > { %v1451_v12 = vrot.slane %v1416_v1, %v2233_v0  ;;  %v1455_v13 = vrot.slane %v1419_v55, %v2233_v0 }
 0x475   : > { %v1475_v14 = vsel %vm1111_vm4, %v1451_v12, %v1474_v4 }
 0x476   : > { %v1422_v25 = vpop.permute.xlu1 %1421  ;;  %v1425_v20 = vpop.permute.xlu0 %1424  ;;  %v1476_v24 = vsel %vm1113_vm5, %v1455_v13, %v1475_v14 }
 0x477   : > { %v1459_v7 = vrot.slane %v1422_v25, %v2233_v0  ;;  %v1463_v26 = vrot.slane %v1425_v20, %v2233_v0 }
 0x479   : > { %v1477_v18 = vsel %vm1115_vm6, %v1459_v7, %v1476_v24 }
 0x47a   : > { %v1428_v21 = vpop.permute.xlu1 %1427  ;;  %v1431_v30 = vpop.permute.xlu0 %1430  ;;  %v1478_v28 = vsel %vm1117_vm7, %v1463_v26, %v1477_v18 }
 0x47b   : > { %v1467_v22 = vrot.slane %v1428_v21, %v2233_v0  ;;  %v1471_v34 = vrot.slane %v1431_v30, %v2233_v0 }
 0x47d   : > { %v1479_v32 = vsel %vm1105_vm1, %v1471_v34, %v1467_v22 }
 0x47e   : > { %v1480_v36 = vpack.c.b16 %v1479_v32, %v1478_v28 }
 0x480   : > { %1660 = vmatmul.mubr.msk.bf16.vlgmr.msra.gmra.mrb[4].mxu1 %vm1122_vm8, %v1480_v36 }
 0x553   : > { %v1521_v37 = vpop.f32.mrb[4].mxu1 }
 0x554   : > { %1528 = vst.msk [vmem:[%s330_s10] sm:$0xff] %vm359_vm0, %v1521_v37  ;;  %v1661_v42 = vpop.f32.mrb[5].mxu1 }
 0x555   : > { %v1524_v43 = vpop.f32.mrb[6].mxu1 }
 0x556   : > { %1530 = vst.msk [vmem:[%s330_s10 + $0x8] sm:$0x3] %vm1529_vm12, %v1524_v43  ;;  %v1662_v0 = vpop.f32.mrb[7].mxu1 }
 0x557 PF: > { %p18_p8 = scmp.ge.s32.totalorder %s1998_s11, 4   ;;  %s2438_s24 = smov %s1896_s25 }
 0x558   : > { %s2439_s25 = smov %s1900_s26  ;;  %s2440_s26 = smov %s2024_s14 }
 0x559   : > { %s2441_s27 = smov %s1998_s11  ;;  %20 = sbr.rel (!%p18_p8) target bundleno = 4 (0x4), region = 95 }
 0x560   :  { %1552 = vsyncpa [#allocation3], 1 }
 0x561   :  { %1554 = vsyncpa [#allocation3 + $0x1], 1 }
 0x562   :  { %1555 = vsyncpa [#allocation5], 1 }

</bundles_post_ra>
